<compile_context>
chip_gen: v6e
topology: v6e:2x2x1
jax: 0.10.0
libtpu: 0.0.40
codegen_flags: <defaults>
</compile_context>

<pallas_src>
import math

import jax
import jax.numpy as jnp
from jax.experimental import pallas as pl
from jax.experimental.pallas import tpu as pltpu

_NEG_BIG = -1.0e30  # bias for padded output columns -> exp() == 0 in f32
_LANE = 128


# -----------------------------------------------------------------------------
# Kernel
# -----------------------------------------------------------------------------
def _make_estimation_kernel(num_hidden: int):
    """Kernel ref layout (positional):
        x_ref,
        [Wfold_h (bf16, in_pad x h_pad), bfold_h (f32, 1 x h_pad)] * num_hidden,
        W_out (bf16, prev_pad x out_pad), b_out (f32, 1 x out_pad),
        out_ref (bf16, tile x out_pad)
    """

    def kernel(*refs):
        x_ref = refs[0]
        out_ref = refs[-1]
        params = refs[1:-1]

        h = x_ref[...]  # f32 (batch_tile, in_dim)

        idx = 0
        for _ in range(num_hidden):
            w_ref, b_ref = params[idx], params[idx + 1]
            idx += 2
            # Linear + BatchNorm1d (eval) folded into (W', b'); bf16 MXU, f32 acc.
            h = (
                jnp.dot(h.astype(w_ref.dtype), w_ref[...],
                        preferred_element_type=jnp.float32)
                + b_ref[...]
            )
            # ReLU (f32 on the VPU). Padded lanes stay exactly 0.
            h = jnp.maximum(h, 0.0)
            # Dropout: identity in eval mode.
            # TODO(synk): training-mode dropout (pltpu.prng_random_bits mask) not emitted.

        # Final Linear (output padded to 128 lanes; padded cols carry a -1e30 bias)
        w_ref, b_ref = params[idx], params[idx + 1]
        logits = (
            jnp.dot(h.astype(w_ref.dtype), w_ref[...],
                    preferred_element_type=jnp.float32)
            + b_ref[...]
        )

        # Numerically stable softmax over the feature axis. Padded columns have
        # logits ~ -1e30 -> exp == 0, so they contribute nothing to the sum.
        m = jnp.max(logits, axis=1, keepdims=True)
        e = jnp.exp(logits - m)
        denom = jnp.sum(e, axis=1, keepdims=True)
        inv = pl.reciprocal(denom, approx=True)       # EUP vrcp (free slot)
        inv = inv * (2.0 - denom * inv)               # one Newton step -> ~f32 accuracy
        out_ref[...] = (e * inv).astype(out_ref.dtype)

    return kernel


# -----------------------------------------------------------------------------
# Parameter prep: fold BatchNorm + bias into the weights, pad widths to 128 lanes,
# cast weights for the MXU.
# -----------------------------------------------------------------------------
def _round_up(x: int, m: int) -> int:
    return -(-x // m) * m


def fold_params(raw, *, output_dim: int, mxu_dtype=jnp.bfloat16, eps: float = 1e-5):
    """raw = {"hidden": [(W, b, gamma, beta, mean, var), ...], "out": (W, b)}
    with W of shape (in, out) and the rest of shape (1, out).

    Hidden widths are zero-padded to a multiple of 128 lanes: padded bias entries are 0
    and the next layer's padded weight rows are 0, so ReLU(0)=0 contributes nothing and
    the numerics are exact. The output layer's padded columns get a -1e30 bias instead
    so softmax ignores them.

    Returns (flat_params, padded_output_dim)."""
    flat = []
    prev_pad = None  # padded width of the previous layer's output (None -> raw input)
    for (w, b, gamma, beta, mean, var) in raw["hidden"]:
        in_dim, h = w.shape
        scale = gamma / jnp.sqrt(var + eps)                          # (1, h)
        w_fold = w * scale                                           # (in, h) f32
        b_fold = (b - mean) * scale + beta                           # (1, h) f32
        h_pad = _round_up(h, _LANE)
        in_pad = prev_pad if prev_pad is not None else in_dim
        w_full = jnp.zeros((in_pad, h_pad), jnp.float32).at[:in_dim, :h].set(w_fold)
        b_full = jnp.zeros((1, h_pad), jnp.float32).at[:, :h].set(b_fold)
        flat += [w_full.astype(mxu_dtype), b_full]
        prev_pad = h_pad

    w_out, b_out = raw["out"]
    prev, out_dim = w_out.shape
    assert out_dim == output_dim
    out_pad = _round_up(max(output_dim, 1), _LANE)                   # lane-dense output
    in_pad = prev_pad if prev_pad is not None else prev
    w_full = jnp.zeros((in_pad, out_pad), jnp.float32).at[:prev, :output_dim].set(w_out)
    b_full = jnp.full((1, out_pad), _NEG_BIG, jnp.float32).at[:, :output_dim].set(b_out)
    flat += [w_full.astype(mxu_dtype), b_full]
    return flat, out_pad


# -----------------------------------------------------------------------------
# Generation-aware tiling
# -----------------------------------------------------------------------------
def _tensorcores_per_chip() -> int:
    """Best-effort detection of TensorCores per chip (2 on v7x/v5p/v4, 1 on v5e/v6e)."""
    try:
        info = pltpu.get_tpu_info()
        for attr in ("tensorcores_per_chip", "num_tensorcores", "num_cores",
                     "cores_per_chip"):
            v = getattr(info, attr, None)
            if isinstance(v, int) and 1 <= v <= 8:
                return v
    except Exception:
        pass
    try:
        kind = jax.devices()[0].device_kind.lower()
        if ("v7" in kind) or ("v5p" in kind) or ("v4" in kind):
            return 2
    except Exception:
        pass
    return 1


def _choose_tiling(batch: int, num_cores: int, cap: int = 4096):
    """Returns (batch_tile, padded_batch).

    Preferences (per perf review):
      * tile is a multiple of 16 (bf16 sublane packing of the MXU LHS);
      * tile divides `batch` so no host-side jnp.pad / extra HBM pass is needed;
      * on 1-TC chips use a single grid step when the batch fits under the cap;
      * on 2-TC chips use >=2 grid steps, preferably a multiple of num_cores."""
    if num_cores <= 1:
        desired = min(cap, _round_up(batch, 16))
    else:
        steps = num_cores
        while _round_up(-(-batch // steps), 16) > cap:
            steps += num_cores
        desired = _round_up(-(-batch // steps), 16)
    desired = max(16, min(desired, cap))

    if batch % 16 == 0:
        best_any = None
        t = (min(desired, batch) // 16) * 16
        while t >= 16:
            if batch % t == 0:
                steps = batch // t
                if steps == 1 or num_cores <= 1 or steps % num_cores == 0:
                    return t, batch            # no padding, core-even (or single) grid
                if best_any is None:
                    best_any = t
            t -= 16
        if best_any is not None:
            return best_any, batch             # no padding, slightly uneven grid
    # Ragged batch: fall back to zero-padding the tail tile.
    # TODO(synk): ragged last tile could be handled in-kernel with a masked store
    # instead of the host-side pad.
    return desired, _round_up(batch, desired)


def _vmem_limit_bytes(tile, in_dim, folded_params, out_pad, out_dtype):
    """Estimated scoped-VMEM need; None if comfortably under the v5e 16 MiB default."""
    out_bytes = jnp.dtype(out_dtype).itemsize
    x_buf = 2 * tile * in_dim * 4                                    # double-buffered x
    out_buf = 2 * tile * out_pad * out_bytes                         # double-buffered out
    act = sum(tile * int(p.shape[1]) * 4 for p in folded_params[0::2])  # f32 activations
    params = sum(int(p.size) * p.dtype.itemsize for p in folded_params)
    est = x_buf + out_buf + act + params
    if est <= 12 * 1024 * 1024:
        return None
    return int(min(2 * est, 100 * 1024 * 1024))


# -----------------------------------------------------------------------------
# Wrapper
# -----------------------------------------------------------------------------
def estimation_network_forward(x, folded_params, *, output_dim: int,
                               batch_tile=None, out_dtype=jnp.bfloat16,
                               slice_output: bool = True):
    """x: (B, input_dim) float32; folded_params from fold_params().

    Returns softmax probabilities of shape (B, output_dim) if slice_output else the
    lane-dense padded buffer (B_pad, 128k) with zeros in the padded columns."""
    B, in_dim = x.shape
    num_hidden = (len(folded_params) - 2) // 2
    out_pad = folded_params[-1].shape[1]

    num_cores = _tensorcores_per_chip()
    if batch_tile is None:
        batch_tile, B_pad = _choose_tiling(B, num_cores)
    else:
        assert batch_tile % 16 == 0, "batch_tile must be a multiple of 16 (bf16 sublanes)"
        B_pad = _round_up(B, batch_tile)

    if B_pad != B:
        # Fallback only (ragged batch); padded rows are sliced off below.
        x = jnp.pad(x, ((0, B_pad - B), (0, 0)))

    kernel = _make_estimation_kernel(num_hidden)

    # x / out tiled over the batch; parameters are full blocks with a constant
    # index_map (0,0) -> the pipeline keeps them resident (no re-DMA per grid step).
    x_spec = pl.BlockSpec((batch_tile, in_dim), lambda i: (i, 0))
    param_specs = [pl.BlockSpec(p.shape, lambda i: (0, 0)) for p in folded_params]
    out_spec = pl.BlockSpec((batch_tile, out_pad), lambda i: (i, 0))

    out = pl.pallas_call(
        kernel,
        out_shape=jax.ShapeDtypeStruct((B_pad, out_pad), out_dtype),
        grid_spec=pltpu.PrefetchScalarGridSpec(
            num_scalar_prefetch=0,
            grid=(B_pad // batch_tile,),
            in_specs=[x_spec] + param_specs,
            out_specs=out_spec,
        ),
        compiler_params=pltpu.CompilerParams(
            dimension_semantics=("parallel",),
            vmem_limit_bytes=_vmem_limit_bytes(batch_tile, in_dim, folded_params,
                                               out_pad, out_dtype),
        ),
    )(x, *folded_params)

    if slice_output:
        return out[:B, :output_dim]
    return out


# -----------------------------------------------------------------------------
# Deterministic raw parameter initialization (mirrors module __init__ shapes)
# -----------------------------------------------------------------------------
def init_raw_params(key, input_dim, output_dim, hidden_dims):
    hidden = []
    prev = input_dim
    for h in hidden_dims:
        key, kw, kb, kg, kbt, km, kv = jax.random.split(key, 7)
        bound = 1.0 / math.sqrt(prev)
        w = jax.random.uniform(kw, (prev, h), jnp.float32, -bound, bound)   # (in, out)
        b = jax.random.uniform(kb, (1, h), jnp.float32, -bound, bound)
        gamma = 1.0 + 0.1 * jax.random.normal(kg, (1, h), jnp.float32)
        beta = 0.1 * jax.random.normal(kbt, (1, h), jnp.float32)
        running_mean = 0.1 * jax.random.normal(km, (1, h), jnp.float32)
        running_var = 1.0 + 0.1 * jax.random.uniform(kv, (1, h), jnp.float32)
        hidden.append((w, b, gamma, beta, running_mean, running_var))
        prev = h
    key, kw, kb = jax.random.split(key, 3)
    bound = 1.0 / math.sqrt(prev)
    w_out = jax.random.uniform(kw, (prev, output_dim), jnp.float32, -bound, bound)
    b_out = jax.random.uniform(kb, (1, output_dim), jnp.float32, -bound, bound)
    return {"hidden": hidden, "out": (w_out, b_out)}


# -----------------------------------------------------------------------------
# Pure-JAX references
# -----------------------------------------------------------------------------
def reference_forward_module(x, raw, eps=1e-5):
    """Original module semantics (eval mode), full f32."""
    h = x.astype(jnp.float32)
    for (w, b, gamma, beta, mean, var) in raw["hidden"]:
        h = h @ w + b
        h = (h - mean) / jnp.sqrt(var + eps) * gamma + beta
        h = jnp.maximum(h, 0.0)
    w, b = raw["out"]
    return jax.nn.softmax(h @ w + b, axis=1)


def reference_forward_folded(x, folded_params, output_dim, out_dtype=jnp.bfloat16):
    """Same numerics as the kernel: folded + lane-padded params, bf16 MXU inputs,
    f32 accumulate, bf16 output store."""
    num_hidden = (len(folded_params) - 2) // 2
    h = x.astype(jnp.float32)
    for l in range(num_hidden):
        w, b = folded_params[2 * l], folded_params[2 * l + 1]
        h = jnp.maximum(
            jnp.dot(h.astype(w.dtype), w, preferred_element_type=jnp.float32) + b, 0.0
        )
    w, b = folded_params[-2], folded_params[-1]
    logits = jnp.dot(h.astype(w.dtype), w, preferred_element_type=jnp.float32) + b
    probs = jax.nn.softmax(logits, axis=1).astype(out_dtype).astype(jnp.float32)
    return probs[:, :output_dim]


if __name__ == "__main__":
    input_dim = 32
    output_dim = 8
    hidden_dims = [64, 32]
    batch = 256  # multiple of 16 -> no host-side pad; 1 step on v5e/v6e, 2 on v7x

    key = jax.random.PRNGKey(0)
    key, kx = jax.random.split(key)
    x = jax.random.normal(kx, (batch, input_dim), jnp.float32)

    raw = init_raw_params(key, input_dim, output_dim, hidden_dims)
    folded, _ = fold_params(raw, output_dim=output_dim, mxu_dtype=jnp.bfloat16)

    out = estimation_network_forward(x, folded, output_dim=output_dim)
    out = jax.block_until_ready(out)
    assert out.shape == (batch, output_dim)
    out_f32 = out.astype(jnp.float32)

    # Tight check vs a matched-precision reference (same fold/pad + bf16 MXU + bf16 store).
    ref_matched = reference_forward_folded(x, folded, output_dim)
    assert jnp.allclose(out_f32, ref_matched, atol=1e-2), "mismatch vs matched reference"

    # Loose check vs the full-f32 original-module semantics (bf16 weight/output rounding).
    ref_module = reference_forward_module(x, raw)
    assert jnp.allclose(out_f32, ref_module, atol=4e-2), "mismatch vs f32 module reference"

    # Softmax rows must sum to ~1 (padded columns contribute exactly 0; bf16 store rounding).
    assert jnp.allclose(jnp.sum(out_f32, axis=1), 1.0, atol=2e-2), "softmax rows must sum to 1"

    print("KERNEL_OK")
</pallas_src>

<mosaic_0001>
module attributes {stable_mosaic.version = 11 : i64} {
  func.func @kernel(%arg0: i32, %arg1: memref<256x32xf32, #tpu.memory_space<vmem>>, %arg2: memref<32x128xbf16, #tpu.memory_space<vmem>>, %arg3: memref<1x128xf32, #tpu.memory_space<vmem>>, %arg4: memref<128x128xbf16, #tpu.memory_space<vmem>>, %arg5: memref<1x128xf32, #tpu.memory_space<vmem>>, %arg6: memref<128x128xbf16, #tpu.memory_space<vmem>>, %arg7: memref<1x128xf32, #tpu.memory_space<vmem>>, %arg8: memref<256x128xbf16, #tpu.memory_space<vmem>>) attributes {dimension_semantics = [#tpu.dimension_semantics<parallel>], iteration_bounds = array<i64: 1>, scalar_prefetch = 0 : i64, scratch_operands = 0 : i64, tpu.core_type = #tpu.core_type<tc>, window_params = [{transform_indices = @transform_0, window_bounds = array<i64: 256, 32>}, {pipeline_mode = #tpu.pipeline_mode<synchronous>, transform_indices = @transform_1, window_bounds = array<i64: 32, 128>}, {pipeline_mode = #tpu.pipeline_mode<synchronous>, transform_indices = @transform_2, window_bounds = array<i64: 1, 128>}, {pipeline_mode = #tpu.pipeline_mode<synchronous>, transform_indices = @transform_3, window_bounds = array<i64: 128, 128>}, {pipeline_mode = #tpu.pipeline_mode<synchronous>, transform_indices = @transform_4, window_bounds = array<i64: 1, 128>}, {pipeline_mode = #tpu.pipeline_mode<synchronous>, transform_indices = @transform_5, window_bounds = array<i64: 128, 128>}, {pipeline_mode = #tpu.pipeline_mode<synchronous>, transform_indices = @transform_6, window_bounds = array<i64: 1, 128>}, {transform_indices = @transform_7, window_bounds = array<i64: 256, 128>}]} {
    %c0 = arith.constant 0 : index
    %c0_0 = arith.constant 0 : index
    %0 = vector.load %arg1[%c0, %c0_0] : memref<256x32xf32, #tpu.memory_space<vmem>>, vector<256x32xf32>
    %1 = arith.truncf %0 : vector<256x32xf32> to vector<256x32xbf16>
    %c0_1 = arith.constant 0 : index
    %c0_2 = arith.constant 0 : index
    %2 = vector.load %arg2[%c0_1, %c0_2] : memref<32x128xbf16, #tpu.memory_space<vmem>>, vector<32x128xbf16>
    %cst = arith.constant dense<0.000000e+00> : vector<256x128xf32>
    %3 = tpu.matmul %1, %2, %cst {dimension_numbers = #tpu.dot_dimension_numbers<[1], [0], [0], [1], [0, 0, 1, 1], [], []>} : vector<256x32xbf16>, vector<32x128xbf16>, vector<256x128xf32> -> vector<256x128xf32>
    %c0_3 = arith.constant 0 : index
    %c0_4 = arith.constant 0 : index
    %4 = vector.load %arg3[%c0_3, %c0_4] : memref<1x128xf32, #tpu.memory_space<vmem>>, vector<1x128xf32>
    %5 = vector.broadcast %4 : vector<1x128xf32> to vector<256x128xf32>
    %6 = arith.addf %3, %5 : vector<256x128xf32>
    %cst_5 = arith.constant 0.000000e+00 : f32
    %7 = vector.broadcast %cst_5 : f32 to vector<256x128xf32>
    %8 = arith.maximumf %6, %7 : vector<256x128xf32>
    %9 = arith.truncf %8 : vector<256x128xf32> to vector<256x128xbf16>
    %c0_6 = arith.constant 0 : index
    %c0_7 = arith.constant 0 : index
    %10 = vector.load %arg4[%c0_6, %c0_7] : memref<128x128xbf16, #tpu.memory_space<vmem>>, vector<128x128xbf16>
    %cst_8 = arith.constant dense<0.000000e+00> : vector<256x128xf32>
    %11 = tpu.matmul %9, %10, %cst_8 {dimension_numbers = #tpu.dot_dimension_numbers<[1], [0], [0], [1], [0, 0, 1, 1], [], []>} : vector<256x128xbf16>, vector<128x128xbf16>, vector<256x128xf32> -> vector<256x128xf32>
    %c0_9 = arith.constant 0 : index
    %c0_10 = arith.constant 0 : index
    %12 = vector.load %arg5[%c0_9, %c0_10] : memref<1x128xf32, #tpu.memory_space<vmem>>, vector<1x128xf32>
    %13 = vector.broadcast %12 : vector<1x128xf32> to vector<256x128xf32>
    %14 = arith.addf %11, %13 : vector<256x128xf32>
    %cst_11 = arith.constant 0.000000e+00 : f32
    %15 = vector.broadcast %cst_11 : f32 to vector<256x128xf32>
    %16 = arith.maximumf %14, %15 : vector<256x128xf32>
    %17 = arith.truncf %16 : vector<256x128xf32> to vector<256x128xbf16>
    %c0_12 = arith.constant 0 : index
    %c0_13 = arith.constant 0 : index
    %18 = vector.load %arg6[%c0_12, %c0_13] : memref<128x128xbf16, #tpu.memory_space<vmem>>, vector<128x128xbf16>
    %cst_14 = arith.constant dense<0.000000e+00> : vector<256x128xf32>
    %19 = tpu.matmul %17, %18, %cst_14 {dimension_numbers = #tpu.dot_dimension_numbers<[1], [0], [0], [1], [0, 0, 1, 1], [], []>} : vector<256x128xbf16>, vector<128x128xbf16>, vector<256x128xf32> -> vector<256x128xf32>
    %c0_15 = arith.constant 0 : index
    %c0_16 = arith.constant 0 : index
    %20 = vector.load %arg7[%c0_15, %c0_16] : memref<1x128xf32, #tpu.memory_space<vmem>>, vector<1x128xf32>
    %21 = vector.broadcast %20 : vector<1x128xf32> to vector<256x128xf32>
    %22 = arith.addf %19, %21 : vector<256x128xf32>
    %cst_17 = arith.constant dense<0xFF800000> : vector<256xf32>
    %23 = vector.multi_reduction <maximumf>, %22, %cst_17 [1] : vector<256x128xf32> to vector<256xf32>
    %24 = vector.shape_cast %23 : vector<256xf32> to vector<256x1xf32>
    %25 = vector.broadcast %24 : vector<256x1xf32> to vector<256x128xf32>
    %26 = arith.subf %22, %25 : vector<256x128xf32>
    %27 = math.exp %26 : vector<256x128xf32>
    %cst_18 = arith.constant dense<0.000000e+00> : vector<256xf32>
    %28 = vector.multi_reduction <add>, %27, %cst_18 [1] : vector<256x128xf32> to vector<256xf32>
    %29 = vector.shape_cast %28 : vector<256xf32> to vector<256x1xf32>
    %30 = tpu.reciprocal %29 {approx = true} : vector<256x1xf32> -> vector<256x1xf32>
    %31 = arith.mulf %29, %30 : vector<256x1xf32>
    %cst_19 = arith.constant 2.000000e+00 : f32
    %32 = vector.broadcast %cst_19 : f32 to vector<256x1xf32>
    %33 = arith.subf %32, %31 : vector<256x1xf32>
    %34 = arith.mulf %30, %33 : vector<256x1xf32>
    %35 = vector.broadcast %34 : vector<256x1xf32> to vector<256x128xf32>
    %36 = arith.mulf %27, %35 : vector<256x128xf32>
    %37 = arith.truncf %36 : vector<256x128xf32> to vector<256x128xbf16>
    %c0_20 = arith.constant 0 : index
    %c0_21 = arith.constant 0 : index
    %38 = vector.load %arg8[%c0_20, %c0_21] : memref<256x128xbf16, #tpu.memory_space<vmem>>, vector<256x128xbf16>
    tpu.vector_store %arg8[%c0_20, %c0_21], %37 {strides = array<i32>} : memref<256x128xbf16, #tpu.memory_space<vmem>>, vector<256x128xbf16>,
    return
  }
  func.func @transform_0(%arg0: i32) -> (i32, i32) {
    %c0_i32 = arith.constant 0 : i32
    %c0_i32_0 = arith.constant 0 : i32
    return %arg0, %c0_i32 : i32, i32
  }
  func.func @transform_1(%arg0: i32) -> (i32, i32) {
    %c0_i32 = arith.constant 0 : i32
    %c0_i32_0 = arith.constant 0 : i32
    %c0_i32_1 = arith.constant 0 : i32
    return %c0_i32, %c0_i32_0 : i32, i32
  }
  func.func @transform_2(%arg0: i32) -> (i32, i32) {
    %c0_i32 = arith.constant 0 : i32
    %c0_i32_0 = arith.constant 0 : i32
    %c0_i32_1 = arith.constant 0 : i32
    return %c0_i32, %c0_i32_0 : i32, i32
  }
  func.func @transform_3(%arg0: i32) -> (i32, i32) {
    %c0_i32 = arith.constant 0 : i32
    %c0_i32_0 = arith.constant 0 : i32
    %c0_i32_1 = arith.constant 0 : i32
    return %c0_i32, %c0_i32_0 : i32, i32
  }
  func.func @transform_4(%arg0: i32) -> (i32, i32) {
    %c0_i32 = arith.constant 0 : i32
    %c0_i32_0 = arith.constant 0 : i32
    %c0_i32_1 = arith.constant 0 : i32
    return %c0_i32, %c0_i32_0 : i32, i32
  }
  func.func @transform_5(%arg0: i32) -> (i32, i32) {
    %c0_i32 = arith.constant 0 : i32
    %c0_i32_0 = arith.constant 0 : i32
    %c0_i32_1 = arith.constant 0 : i32
    return %c0_i32, %c0_i32_0 : i32, i32
  }
  func.func @transform_6(%arg0: i32) -> (i32, i32) {
    %c0_i32 = arith.constant 0 : i32
    %c0_i32_0 = arith.constant 0 : i32
    %c0_i32_1 = arith.constant 0 : i32
    return %c0_i32, %c0_i32_0 : i32, i32
  }
  func.func @transform_7(%arg0: i32) -> (i32, i32) {
    %c0_i32 = arith.constant 0 : i32
    %c0_i32_0 = arith.constant 0 : i32
    return %arg0, %c0_i32 : i32, i32
  }
}

</mosaic_0001>

<bundles_post_ra>
// kernel: tpu_custom_call.1
= control target key start
LH: loop header
LB: loop body
LE: loop exit
PB: predicated region body
PF: predicated region fallthrough
CT: control target
= control target key end

     0   :  { %vm99_vm0 = vcmask 261120   ;;  %s2604_s0 = inlined_call_operand.vmem [shape: f32[256,32], index: 0, kind: input, shape index: {}]   ;;  %s2605_s1 = inlined_call_operand.vmem [shape: bf16[32,128], index: 1, kind: input, shape index: {}]   ;;  %s2606_s2 = inlined_call_operand.vmem [shape: f32[1,128], index: 2, kind: input, shape index: {}]   ;;  %s2607_s3 = inlined_call_operand.vmem [shape: bf16[128,128], index: 3, kind: input, shape index: {}]   ;;  %s2608_s4 = inlined_call_operand.vmem [shape: f32[1,128], index: 4, kind: input, shape index: {}]   ;;  %s2609_s5 = inlined_call_operand.vmem [shape: bf16[128,128], index: 5, kind: input, shape index: {}]   ;;  %s2610_s6 = inlined_call_operand.vmem [shape: f32[1,128], index: 6, kind: input, shape index: {}]   ;;  %s2611_s7 = inlined_call_operand.hbm [shape: bf16[256,128], index: 7, kind: output, shape index: {}]  }
   0x1   :  { %v1830_v0 = vld [vmem:[%s2605_s1 + $0x8] sm:$0xff]   ;;  %v1831_v1 = vld [vmem:[%s2605_s1] sm:$0xff]   ;;  %v30_v5 = vld [vmem:[%s2604_s0 + $0x10] sm:$0xff] }
   0x2   :  { %1691 = vmatprep.subr.bf16.mxu0 %v1830_v0  ;;  %v28_v2 = vld [vmem:[%s2604_s0] sm:$0xff]  ;;  %v29_v3 = vld [vmem:[%s2604_s0 + $0x8] sm:$0xff]  ;;  %1823 = vmatprep.subr.bf16.mxu1 %v1830_v0  ;;  %v31_v6 = vld [vmem:[%s2604_s0 + $0x18] sm:$0xff] }
   0x3   :  { %1692 = vmatpush3.bf16.msra.mxu0 %v1830_v0  ;;  %v60_v4 = vpack.c.bf16 %v29_v3, %v28_v2  ;;  %1825 = vmatpush3.bf16.msra.mxu1 %v1830_v0  ;;  %v32_v7 = vld [vmem:[%s2604_s0 + $0x20] sm:$0xff]  ;;  %v33_v8 = vld [vmem:[%s2604_s0 + $0x28] sm:$0xff]  ;;  %v61_v9 = vpack.c.bf16 %v31_v6, %v30_v5  ;;  %v46_v14 = vld [vmem:[%s2604_s0 + $0x90] sm:$0xff] }
   0x4   :  { %1693 = vmatprep.subr.bf16.mxu0 %v1831_v1  ;;  %1824 = vmatprep.subr.bf16.mxu1 %v1831_v1  ;;  %v62_v10 = vpack.c.bf16 %v33_v8, %v32_v7  ;;  %v44_v11 = vld [vmem:[%s2604_s0 + $0x80] sm:$0xff]  ;;  %v45_v12 = vld [vmem:[%s2604_s0 + $0x88] sm:$0xff]  ;;  %v47_v15 = vld [vmem:[%s2604_s0 + $0x98] sm:$0xff] }
   0x5   :  { %1695 = vmatprep.mubr.msk.bf16.mxu0 %vm99_vm0, %v60_v4  ;;  %v68_v13 = vpack.c.bf16 %v45_v12, %v44_v11  ;;  %v48_v16 = vld [vmem:[%s2604_s0 + $0xa0] sm:$0xff]  ;;  %v69_v17 = vpack.c.bf16 %v47_v15, %v46_v14  ;;  %v49_v18 = vld [vmem:[%s2604_s0 + $0xa8] sm:$0xff]  ;;  %v34_v19 = vld [vmem:[%s2604_s0 + $0x30] sm:$0xff] }
   0x6   :  { %v35_v20 = vld [vmem:[%s2604_s0 + $0x38] sm:$0xff]  ;;  %v36_v21 = vld [vmem:[%s2604_s0 + $0x40] sm:$0xff]  ;;  %v70_v22 = vpack.c.bf16 %v49_v18, %v48_v16  ;;  %v37_v23 = vld [vmem:[%s2604_s0 + $0x48] sm:$0xff] }
   0x7   :  { %1694 = vmatpush3.bf16.msra.mxu0 %v1831_v1  ;;  %1826 = vmatpush3.bf16.msra.mxu1 %v1831_v1  ;;  %v50_v24 = vld [vmem:[%s2604_s0 + $0xb0] sm:$0xff]  ;;  %v51_v25 = vld [vmem:[%s2604_s0 + $0xb8] sm:$0xff]  ;;  %v52_v26 = vld [vmem:[%s2604_s0 + $0xc0] sm:$0xff]  ;;  %v63_v29 = vpack.c.bf16 %v35_v20, %v34_v19  ;;  %v64_v31 = vpack.c.bf16 %v37_v23, %v36_v21 }
   0x8   :  { %1711 = vmatprep.mubr.msk.bf16.mxu1 %vm99_vm0, %v68_v13  ;;  %v53_v27 = vld [vmem:[%s2604_s0 + $0xc8] sm:$0xff]  ;;  %v1832_v28 = vld [vmem:[%s2607_s3 + $0x38] sm:$0xff]   ;;  %v1833_v30 = vld [vmem:[%s2607_s3 + $0x30] sm:$0xff]   ;;  %v71_v32 = vpack.c.bf16 %v51_v25, %v50_v24 }
   0x9   :  { %1727 = vmatprep.subr.bf16.mxu1 %v1832_v28  ;;  %v72_v33 = vpack.c.bf16 %v53_v27, %v52_v26  ;;  %v38_v34 = vld [vmem:[%s2604_s0 + $0x50] sm:$0xff]  ;;  %v39_v35 = vld [vmem:[%s2604_s0 + $0x58] sm:$0xff]  ;;  %v1834_v36 = vld [vmem:[%s2607_s3 + $0x28] sm:$0xff]  }
   0xa   :  { %1696 = vmatmul.mubr.msk.bf16.vlgmr.msra.gmra.mxu0 %vm99_vm0, %v61_v9  ;;  %1712 = vmatmul.mubr.msk.bf16.vlgmr.msra.gmra.mxu1 %vm99_vm0, %v69_v17  ;;  %v40_v37 = vld [vmem:[%s2604_s0 + $0x60] sm:$0xff]  ;;  %v41_v38 = vld [vmem:[%s2604_s0 + $0x68] sm:$0xff]  ;;  %v54_v39 = vld [vmem:[%s2604_s0 + $0xd0] sm:$0xff]  ;;  %v65_v44 = vpack.c.bf16 %v39_v35, %v38_v34 }
   0xb   :  { %1699 = vmatprep.mubr.msk.bf16.mxu0 %vm99_vm0, %v62_v10  ;;  %1715 = vmatprep.mubr.msk.bf16.mxu1 %vm99_vm0, %v70_v22  ;;  %v55_v40 = vld [vmem:[%s2604_s0 + $0xd8] sm:$0xff]  ;;  %v56_v41 = vld [vmem:[%s2604_s0 + $0xe0] sm:$0xff]  ;;  %v57_v42 = vld [vmem:[%s2604_s0 + $0xe8] sm:$0xff]  ;;  %v66_v45 = vpack.c.bf16 %v41_v38, %v40_v37 }
   0xc   :  { %1728 = vmatpush3.bf16.msra.mxu1 %v1832_v28  ;;  %v1835_v43 = vld [vmem:[%s2607_s3 + $0x20] sm:$0xff]   ;;  %v73_v46 = vpack.c.bf16 %v55_v40, %v54_v39  ;;  %v74_v47 = vpack.c.bf16 %v57_v42, %v56_v41  ;;  %v1836_v48 = vld [vmem:[%s2607_s3 + $0x18] sm:$0xff]  }
   0xd   :  { %1729 = vmatprep.subr.bf16.mxu1 %v1833_v30 }
  0x10   :  { %1730 = vmatpush3.bf16.msra.mxu1 %v1833_v30 }
  0x11   :  { %1731 = vmatprep.subr.bf16.mxu1 %v1834_v36 }
  0x12   :  { %1700 = vmatmul.mubr.msk.bf16.gmra.mxu0 %vm99_vm0, %v63_v29  ;;  %1716 = vmatmul.mubr.msk.bf16.gmra.mxu1 %vm99_vm0, %v71_v32 }
  0x13   :  { %1703 = vmatprep.mubr.msk.bf16.mxu0 %vm99_vm0, %v64_v31  ;;  %1719 = vmatprep.mubr.msk.bf16.mxu1 %vm99_vm0, %v72_v33 }
  0x14   :  { %1732 = vmatpush3.bf16.msra.mxu1 %v1834_v36 }
  0x15   :  { %1733 = vmatprep.subr.bf16.mxu1 %v1835_v43 }
  0x16   :  { %12 = vsyncpa [#allocation3], 0  ;;  %v42_v49 = vld [vmem:[%s2604_s0 + $0x70] sm:$0xff]  ;;  %v43_v50 = vld [vmem:[%s2604_s0 + $0x78] sm:$0xff] }
  0x17   :  { %v58_v51 = vld [vmem:[%s2604_s0 + $0xf0] sm:$0xff]  ;;  %v59_v52 = vld [vmem:[%s2604_s0 + $0xf8] sm:$0xff]  ;;  %v67_v53 = vpack.c.bf16 %v43_v50, %v42_v49  ;;  %v1838_v56 = vld [vmem:[%s2607_s3 + $0x8] sm:$0xff]  }
  0x18   :  { %1734 = vmatpush3.bf16.msra.mxu1 %v1835_v43  ;;  %v75_v54 = vpack.c.bf16 %v59_v52, %v58_v51  ;;  %v1837_v55 = vld [vmem:[%s2607_s3 + $0x10] sm:$0xff]   ;;  %v1839_v57 = vld [vmem:[%s2607_s3] sm:$0xff]   ;;  %v1840_v58 = vld [vmem:[%s2609_s5 + $0x38] sm:$0xff]  }
  0x19   :  { %1735 = vmatprep.subr.bf16.mxu1 %v1836_v48  ;;  %v1841_v59 = vld [vmem:[%s2609_s5 + $0x30] sm:$0xff]   ;;  %1775 = vmatprep.subr.bf16.mxu0 %v1840_v58  ;;  %v1842_v60 = vld [vmem:[%s2609_s5 + $0x28] sm:$0xff]   ;;  %v1843_v61 = vld [vmem:[%s2609_s5 + $0x20] sm:$0xff]  }
  0x1a   :  { %1704 = vmatmul.mubr.msk.bf16.gmra.mxu0 %vm99_vm0, %v65_v44  ;;  %1720 = vmatmul.mubr.msk.bf16.gmra.mxu1 %vm99_vm0, %v73_v46  ;;  %v1844_v62 = vld [vmem:[%s2609_s5 + $0x18] sm:$0xff]   ;;  %v2203_v2 = vld [vmem:[%s2606_s2] ss:$0 sm:$0xff] }
  0x1b   :  { %1707 = vmatprep.mubr.msk.bf16.mxu0 %vm99_vm0, %v66_v45  ;;  %1723 = vmatprep.mubr.msk.bf16.mxu1 %vm99_vm0, %v74_v47 }
  0x1c   :  { %1736 = vmatpush3.bf16.msra.mxu1 %v1836_v48  ;;  %1776 = vmatpush3.bf16.msra.mxu0 %v1840_v58 }
  0x1d   :  { %1737 = vmatprep.subr.bf16.mxu1 %v1837_v55  ;;  %1777 = vmatprep.subr.bf16.mxu0 %v1841_v59 }
  0x20   :  { %1738 = vmatpush3.bf16.msra.mxu1 %v1837_v55  ;;  %1778 = vmatpush3.bf16.msra.mxu0 %v1841_v59 }
  0x21   :  { %1739 = vmatprep.subr.bf16.mxu1 %v1838_v56  ;;  %1779 = vmatprep.subr.bf16.mxu0 %v1842_v60 }
  0x22   :  { %1708 = vmatmul.mubr.msk.bf16.gmra.mxu0 %vm99_vm0, %v67_v53  ;;  %1724 = vmatmul.mubr.msk.bf16.gmra.mxu1 %vm99_vm0, %v75_v54 }
  0x24   :  { %1740 = vmatpush3.bf16.msra.mxu1 %v1838_v56  ;;  %1780 = vmatpush3.bf16.msra.mxu0 %v1842_v60 }
  0x25   :  { %1741 = vmatprep.subr.bf16.mxu1 %v1839_v57  ;;  %1781 = vmatprep.subr.bf16.mxu0 %v1843_v61 }
  0x28   :  { %1742 = vmatpush3.bf16.msra.mxu1 %v1839_v57  ;;  %1782 = vmatpush3.bf16.msra.mxu0 %v1843_v61 }
  0x29   :  { %1783 = vmatprep.subr.bf16.mxu0 %v1844_v62 }
  0x2c   :  { %1784 = vmatpush3.bf16.msra.mxu0 %v1844_v62 }
  0xca   :  { %v1697_v63 = vpop.f32.mrf.mxu0  ;;  %v2198_v0 = vpop.f32.mrf.mxu1 }
  0xcb   :  { %v191_v8 = vadd.f32 %v1697_v63, %v2203_v2 }
  0xcc   :  { %v182_v1 = vpop.f32.mrf.mxu0  ;;  %v246_v3 = vpop.f32.mrf.mxu1 }
  0xcd   :  { %v183_v5 = vadd.f32 %v2203_v2, %v182_v1  ;;  %v311_v17 = vmax.f32 %v191_v8, 0.0  ;;  %v247_v53 = vadd.f32 %v2203_v2, %v246_v3 }
  0xce   :  { %v1698_v4 = vpop.f32.mrf.mxu0  ;;  %v2207_v7 = vpop.f32.mrf.mxu1 }
  0xcf   :  { %v194_v6 = vadd.f32 %v1698_v4, %v2203_v2  ;;  %v309_v14 = vmax.f32 %v183_v5, 0.0  ;;  %v325_v62 = vmax.f32 %v247_v53, 0.0  ;;  %v2262_v53 = vld [vmem:[%s2608_s4] ss:$0 sm:$0xff] }
  0xd0   :  { %v185_v9 = vpop.f32.mrf.mxu0  ;;  %v249_v11 = vpop.f32.mrf.mxu1 }
  0xd1   :  { %v186_v10 = vadd.f32 %v2203_v2, %v185_v9  ;;  %v312_v12 = vmax.f32 %v194_v6, 0.0  ;;  %v250_v54 = vadd.f32 %v2203_v2, %v249_v11 }
  0xd2   :  { %v1701_v13 = vpop.f32.mrf.mxu0  ;;  %v2211_v16 = vpop.f32.mrf.mxu1 }
  0xd3   :  { %v310_v15 = vmax.f32 %v186_v10, 0.0  ;;  %v342_v21 = vpack.c.bf16 %v312_v12, %v311_v17  ;;  %v207_v26 = vadd.f32 %v1701_v13, %v2203_v2  ;;  %v326_v1 = vmax.f32 %v250_v54, 0.0 }
  0xd4   :  { %v198_v18 = vpop.f32.mrf.mxu0  ;;  %v262_v20 = vpop.f32.mrf.mxu1  ;;  %v255_v13 = vadd.f32 %v2198_v0, %v2203_v2  ;;  %v271_v0 = vadd.f32 %v2211_v16, %v2203_v2 }
  0xd5   :  { %v341_v19 = vpack.c.bf16 %v310_v15, %v309_v14  ;;  %v199_v23 = vadd.f32 %v2203_v2, %v198_v18  ;;  %v315_v34 = vmax.f32 %v207_v26, 0.0  ;;  %v349_v10 = vpack.c.bf16 %v326_v1, %v325_v62 }
  0xd6   :  { %v1702_v22 = vpop.f32.mrf.mxu0  ;;  %v2215_v25 = vpop.f32.mrf.mxu1  ;;  %v263_v11 = vadd.f32 %v2203_v2, %v262_v20  ;;  %v258_v15 = vadd.f32 %v2207_v7, %v2203_v2 }
  0xd7   :  { %v210_v24 = vadd.f32 %v1702_v22, %v2203_v2  ;;  %1743 = vmatprep.mubr.bf16.mxu1 %v341_v19  ;;  %v313_v32 = vmax.f32 %v199_v23, 0.0  ;;  %v274_v7 = vadd.f32 %v2215_v25, %v2203_v2 }
  0xd8   :  { %v201_v27 = vpop.f32.mrf.mxu0  ;;  %1744 = vmatmul.mubr.bf16.vlgmr.msra.gmra.mxu1 %v342_v21  ;;  %v265_v31 = vpop.f32.mrf.mxu1  ;;  %v329_v18 = vmax.f32 %v263_v11, 0.0  ;;  %v327_v21 = vmax.f32 %v255_v13, 0.0  ;;  %v328_v22 = vmax.f32 %v258_v15, 0.0 }
  0xd9   :  { %v202_v28 = vadd.f32 %v2203_v2, %v201_v27  ;;  %v316_v29 = vmax.f32 %v210_v24, 0.0  ;;  %v266_v12 = vadd.f32 %v2203_v2, %v265_v31  ;;  %v331_v31 = vmax.f32 %v271_v0, 0.0 }
  0xda   :  { %v1705_v30 = vpop.f32.mrf.mxu0  ;;  %v2219_v39 = vpop.f32.mrf.mxu1  ;;  %v350_v27 = vpack.c.bf16 %v328_v22, %v327_v21 }
  0xdb   :  { %v314_v33 = vmax.f32 %v202_v28, 0.0  ;;  %v344_v37 = vpack.c.bf16 %v316_v29, %v315_v34  ;;  %v223_v42 = vadd.f32 %v1705_v30, %v2203_v2  ;;  %v330_v19 = vmax.f32 %v266_v12, 0.0 }
  0xdc   :  { %v214_v35 = vpop.f32.mrf.mxu0  ;;  %v278_v47 = vpop.f32.mrf.mxu1  ;;  %v287_v16 = vadd.f32 %v2219_v39, %v2203_v2  ;;  %v1845_v39 = vld [vmem:[%s2609_s5 + $0x10] sm:$0xff]  }
  0xdd   :  { %v343_v36 = vpack.c.bf16 %v314_v33, %v313_v32  ;;  %v215_v40 = vadd.f32 %v2203_v2, %v214_v35  ;;  %v319_v50 = vmax.f32 %v223_v42, 0.0  ;;  %v351_v24 = vpack.c.bf16 %v330_v19, %v329_v18  ;;  %1785 = vmatprep.subr.bf16.mxu0 %v1845_v39 }
  0xde   :  { %v1706_v38 = vpop.f32.mrf.mxu0  ;;  %v1722_v57 = vpop.f32.mrf.mxu1  ;;  %v279_v20 = vadd.f32 %v2203_v2, %v278_v47  ;;  %v332_v32 = vmax.f32 %v274_v7, 0.0  ;;  %1786 = vmatpush3.bf16.msra.mxu0 %v1845_v39 }
  0xdf   :  { %v226_v41 = vadd.f32 %v1706_v38, %v2203_v2  ;;  %1747 = vmatprep.mubr.bf16.mxu1 %v343_v36  ;;  %v317_v48 = vmax.f32 %v215_v40, 0.0  ;;  %v290_v38 = vadd.f32 %v1722_v57, %v2203_v2 }
  0xe0   :  { %v217_v43 = vpop.f32.mrf.mxu0  ;;  %1748 = vmatmul.mubr.bf16.gmra.mxu1 %v344_v37  ;;  %v281_v3 = vpop.f32.mrf.mxu1  ;;  %v333_v29 = vmax.f32 %v279_v20, 0.0  ;;  %v352_v37 = vpack.c.bf16 %v332_v32, %v331_v31 }
  0xe1   :  { %v218_v44 = vadd.f32 %v2203_v2, %v217_v43  ;;  %v320_v45 = vmax.f32 %v226_v41, 0.0  ;;  %v282_v26 = vadd.f32 %v2203_v2, %v281_v3  ;;  %v335_v41 = vmax.f32 %v287_v16, 0.0 }
  0xe2   :  { %v1709_v46 = vpop.f32.mrf.mxu0  ;;  %v1725_v17 = vpop.f32.mrf.mxu1  ;;  %v336_v42 = vmax.f32 %v290_v38, 0.0 }
  0xe3   :  { %v318_v49 = vmax.f32 %v218_v44, 0.0  ;;  %v346_v55 = vpack.c.bf16 %v320_v45, %v319_v50  ;;  %v239_v60 = vadd.f32 %v1709_v46, %v2203_v2  ;;  %v334_v30 = vmax.f32 %v282_v26, 0.0  ;;  %v1846_v50 = vld [vmem:[%s2609_s5 + $0x8] sm:$0xff]  }
  0xe4   :  { %v230_v51 = vpop.f32.mrf.mxu0  ;;  %v294_v23 = vpop.f32.mrf.mxu1  ;;  %v354_v44 = vpack.c.bf16 %v336_v42, %v335_v41  ;;  %v303_v45 = vadd.f32 %v1725_v17, %v2203_v2  ;;  %1787 = vmatprep.subr.bf16.mxu0 %v1846_v50 }
  0xe5   :  { %v345_v52 = vpack.c.bf16 %v318_v49, %v317_v48  ;;  %v231_v58 = vadd.f32 %v2203_v2, %v230_v51  ;;  %v323_v8 = vmax.f32 %v239_v60, 0.0  ;;  %v353_v34 = vpack.c.bf16 %v334_v30, %v333_v29  ;;  %1788 = vmatpush3.bf16.msra.mxu0 %v1846_v50 }
  0xe6   :  { %v1710_v56 = vpop.f32.mrf.mxu0  ;;  %v1726_v28 = vpop.f32.mrf.mxu1  ;;  %v295_v35 = vadd.f32 %v2203_v2, %v294_v23  ;;  %v339_v47 = vmax.f32 %v303_v45, 0.0 }
  0xe7   :  { %v242_v59 = vadd.f32 %v1710_v56, %v2203_v2  ;;  %1751 = vmatprep.mubr.bf16.mxu1 %v345_v52  ;;  %v321_v5 = vmax.f32 %v231_v58, 0.0  ;;  %v306_v46 = vadd.f32 %v1726_v28, %v2203_v2 }
  0xe8   :  { %v233_v61 = vpop.f32.mrf.mxu0  ;;  %1752 = vmatmul.mubr.bf16.gmra.mxu1 %v346_v55  ;;  %v297_v33 = vpop.f32.mrf.mxu1  ;;  %v337_v25 = vmax.f32 %v295_v35, 0.0 }
  0xe9   :  { %v234_v63 = vadd.f32 %v2203_v2, %v233_v61  ;;  %v324_v4 = vmax.f32 %v242_v59, 0.0  ;;  %v298_v36 = vadd.f32 %v2203_v2, %v297_v33  ;;  %v340_v48 = vmax.f32 %v306_v46, 0.0  ;;  %v1847_v2 = vld [vmem:[%s2609_s5] sm:$0xff]  }
  0xea   :  { %1789 = vmatprep.subr.bf16.mxu0 %v1847_v2 }
  0xeb   :  { %v322_v6 = vmax.f32 %v234_v63, 0.0  ;;  %v348_v14 = vpack.c.bf16 %v324_v4, %v323_v8  ;;  %v338_v40 = vmax.f32 %v298_v36, 0.0  ;;  %v356_v49 = vpack.c.bf16 %v340_v48, %v339_v47  ;;  %1790 = vmatpush3.bf16.msra.mxu0 %v1847_v2 }
  0xed   :  { %v347_v9 = vpack.c.bf16 %v322_v6, %v321_v5  ;;  %v355_v43 = vpack.c.bf16 %v338_v40, %v337_v25 }
  0xef   :  { %1755 = vmatprep.mubr.bf16.mxu1 %v347_v9 }
  0xf0   :  { %1756 = vmatmul.mubr.bf16.gmra.mxu1 %v348_v14 }
  0xf1   :  { %1759 = vmatprep.mubr.bf16.mxu1 %v349_v10 }
  0xf8   :  { %1760 = vmatmul.mubr.bf16.gmra.mxu1 %v350_v27 }
  0xf9   :  { %1763 = vmatprep.mubr.bf16.mxu1 %v351_v24 }
 0x100   :  { %1764 = vmatmul.mubr.bf16.gmra.mxu1 %v352_v37 }
 0x101   :  { %1767 = vmatprep.mubr.bf16.mxu1 %v353_v34 }
 0x108   :  { %1768 = vmatmul.mubr.bf16.gmra.mxu1 %v354_v44 }
 0x109   :  { %1771 = vmatprep.mubr.bf16.mxu1 %v355_v43 }
 0x110   :  { %1772 = vmatmul.mubr.bf16.gmra.mxu1 %v356_v49 }
 0x198   :  { %v1745_v51 = vpop.f32.mrf.mxu1 }
 0x199   :  { %v471_v57 = vadd.f32 %v1745_v51, %v2262_v53 }
 0x19a   :  { %v462_v52 = vpop.f32.mrf.mxu1 }
 0x19b   :  { %v463_v55 = vadd.f32 %v2262_v53, %v462_v52  ;;  %v591_v1 = vmax.f32 %v471_v57, 0.0 }
 0x19c   :  { %v1746_v54 = vpop.f32.mrf.mxu1 }
 0x19d   :  { %v474_v56 = vadd.f32 %v1746_v54, %v2262_v53  ;;  %v589_v62 = vmax.f32 %v463_v55, 0.0 }
 0x19e   :  { %v465_v58 = vpop.f32.mrf.mxu1 }
 0x19f   :  { %v466_v59 = vadd.f32 %v2262_v53, %v465_v58  ;;  %v592_v60 = vmax.f32 %v474_v56, 0.0 }
 0x1a0   :  { %v1749_v61 = vpop.f32.mrf.mxu1 }
 0x1a1   :  { %v590_v63 = vmax.f32 %v466_v59, 0.0  ;;  %v622_v5 = vpack.c.bf16 %v592_v60, %v591_v1  ;;  %v487_v10 = vadd.f32 %v1749_v61, %v2262_v53 }
 0x1a2   :  { %v478_v4 = vpop.f32.mrf.mxu1 }
 0x1a3   :  { %v621_v3 = vpack.c.bf16 %v590_v63, %v589_v62  ;;  %v479_v8 = vadd.f32 %v2262_v53, %v478_v4  ;;  %v595_v18 = vmax.f32 %v487_v10, 0.0 }
 0x1a4   :  { %v1750_v6 = vpop.f32.mrf.mxu1 }
 0x1a5   :  { %v490_v9 = vadd.f32 %v1750_v6, %v2262_v53  ;;  %1791 = vmatprep.mubr.bf16.mxu0 %v621_v3  ;;  %v593_v15 = vmax.f32 %v479_v8, 0.0 }
 0x1a6   :  { %v481_v11 = vpop.f32.mrf.mxu1  ;;  %1792 = vmatmul.mubr.bf16.vlgmr.msra.gmra.mxu0 %v622_v5 }
 0x1a7   :  { %v482_v12 = vadd.f32 %v2262_v53, %v481_v11  ;;  %v596_v13 = vmax.f32 %v490_v9, 0.0 }
 0x1a8   :  { %v1753_v14 = vpop.f32.mrf.mxu1 }
 0x1a9   :  { %v594_v17 = vmax.f32 %v482_v12, 0.0  ;;  %v624_v22 = vpack.c.bf16 %v596_v13, %v595_v18  ;;  %v503_v26 = vadd.f32 %v1753_v14, %v2262_v53 }
 0x1aa   :  { %v494_v19 = vpop.f32.mrf.mxu1 }
 0x1ab   :  { %v623_v21 = vpack.c.bf16 %v594_v17, %v593_v15  ;;  %v495_v24 = vadd.f32 %v2262_v53, %v494_v19  ;;  %v599_v31 = vmax.f32 %v503_v26, 0.0 }
 0x1ac   :  { %v1754_v23 = vpop.f32.mrf.mxu1 }
 0x1ad   :  { %v506_v20 = vadd.f32 %v1754_v23, %v2262_v53  ;;  %1795 = vmatprep.mubr.bf16.mxu0 %v623_v21  ;;  %v597_v29 = vmax.f32 %v495_v24, 0.0 }
 0x1ae   :  { %v497_v27 = vpop.f32.mrf.mxu1  ;;  %1796 = vmatmul.mubr.bf16.gmra.mxu0 %v624_v22 }
 0x1af   :  { %v498_v0 = vadd.f32 %v2262_v53, %v497_v27  ;;  %v600_v7 = vmax.f32 %v506_v20, 0.0 }
 0x1b0   :  { %v1757_v28 = vpop.f32.mrf.mxu1 }
 0x1b1   :  { %v598_v30 = vmax.f32 %v498_v0, 0.0  ;;  %v626_v34 = vpack.c.bf16 %v600_v7, %v599_v31  ;;  %v519_v16 = vadd.f32 %v1757_v28, %v2262_v53 }
 0x1b2   :  { %v510_v32 = vpop.f32.mrf.mxu1 }
 0x1b3   :  { %v625_v33 = vpack.c.bf16 %v598_v30, %v597_v29  ;;  %v511_v36 = vadd.f32 %v2262_v53, %v510_v32  ;;  %v603_v44 = vmax.f32 %v519_v16, 0.0 }
 0x1b4   :  { %v1758_v35 = vpop.f32.mrf.mxu1 }
 0x1b5   :  { %v522_v37 = vadd.f32 %v1758_v35, %v2262_v53  ;;  %1799 = vmatprep.mubr.bf16.mxu0 %v625_v33  ;;  %v601_v42 = vmax.f32 %v511_v36, 0.0 }
 0x1b6   :  { %v513_v38 = vpop.f32.mrf.mxu1  ;;  %1800 = vmatmul.mubr.bf16.gmra.mxu0 %v626_v34 }
 0x1b7   :  { %v514_v25 = vadd.f32 %v2262_v53, %v513_v38  ;;  %v604_v40 = vmax.f32 %v522_v37, 0.0 }
 0x1b8   :  { %v1761_v41 = vpop.f32.mrf.mxu1 }
 0x1b9   :  { %v602_v43 = vmax.f32 %v514_v25, 0.0  ;;  %v628_v47 = vpack.c.bf16 %v604_v40, %v603_v44  ;;  %v535_v50 = vadd.f32 %v1761_v41, %v2262_v53  ;;  %v2299_v25 = vld [vmem:[%s2610_s6] ss:$0 sm:$0xff]  ;;  %s1998_s6 = smov [#allocation2]  }
 0x1ba   :  { %v526_v45 = vpop.f32.mrf.mxu1  ;;  %s1418_s29 = sshll.u32 %s1998_s6, 4  ;;  %s1419_s29 = int_to_ptr.vmem [resolvable:$true] %s1418_s29 }
 0x1bb   :  { %v627_v46 = vpack.c.bf16 %v602_v43, %v601_v42  ;;  %v527_v49 = vadd.f32 %v2262_v53, %v526_v45  ;;  %v607_v57 = vmax.f32 %v535_v50, 0.0  ;;  %s1976_s30 = scalar_lea.vmem %s1419_s29, 2048  ;;  %p1981_p1 = scmp.lt.s32.totalorder %s1419_s29, %s1419_s29 }
 0x1bc   :  { %v1762_v48 = vpop.f32.mrf.mxu1  ;;  %p1977_p0 = scmp.ne.s32.totalorder %s1419_s29, %s1976_s30  ;;  %p1982_p2 = scmp.lt.s32.totalorder %s1976_s30, %s1976_s30 }
 0x1bd   :  { %v538_v39 = vadd.f32 %v1762_v48, %v2262_v53  ;;  %1803 = vmatprep.mubr.bf16.mxu0 %v627_v46  ;;  %v605_v55 = vmax.f32 %v527_v49, 0.0 }
 0x1be   :  { %v529_v2 = vpop.f32.mrf.mxu1  ;;  %1804 = vmatmul.mubr.bf16.gmra.mxu0 %v628_v47  ;;  %p1983_p3 = por %p1982_p2, %p1981_p1 }
 0x1bf   :  { %v530_v51 = vadd.f32 %v2262_v53, %v529_v2  ;;  %v608_v52 = vmax.f32 %v538_v39, 0.0 }
 0x1c0   :  { %v1765_v54 = vpop.f32.mrf.mxu1  ;;  %p1984_p4 = pnand %p1983_p3, %p1977_p0 }
 0x1c1   :  { %v606_v56 = vmax.f32 %v530_v51, 0.0  ;;  %v630_v60 = vpack.c.bf16 %v608_v52, %v607_v57  ;;  %v551_v1 = vadd.f32 %v1765_v54, %v2262_v53 }
 0x1c2   :  { %v542_v58 = vpop.f32.mrf.mxu1 }
 0x1c3   :  { %v629_v59 = vpack.c.bf16 %v606_v56, %v605_v55  ;;  %v543_v62 = vadd.f32 %v2262_v53, %v542_v58  ;;  %v611_v10 = vmax.f32 %v551_v1, 0.0 }
 0x1c4   :  { %v1766_v61 = vpop.f32.mrf.mxu1 }
 0x1c5   :  { %v554_v63 = vadd.f32 %v1766_v61, %v2262_v53  ;;  %1807 = vmatprep.mubr.bf16.mxu0 %v629_v59  ;;  %v609_v8 = vmax.f32 %v543_v62, 0.0 }
 0x1c6   :  { %v545_v4 = vpop.f32.mrf.mxu1  ;;  %1808 = vmatmul.mubr.bf16.gmra.mxu0 %v630_v60 }
 0x1c7   :  { %v546_v3 = vadd.f32 %v2262_v53, %v545_v4  ;;  %v612_v5 = vmax.f32 %v554_v63, 0.0 }
 0x1c8   :  { %v1769_v6 = vpop.f32.mrf.mxu1 }
 0x1c9   :  { %v610_v9 = vmax.f32 %v546_v3, 0.0  ;;  %v632_v13 = vpack.c.bf16 %v612_v5, %v611_v10  ;;  %v567_v18 = vadd.f32 %v1769_v6, %v2262_v53 }
 0x1ca   :  { %v558_v11 = vpop.f32.mrf.mxu1 }
 0x1cb   :  { %v631_v12 = vpack.c.bf16 %v610_v9, %v609_v8  ;;  %v559_v15 = vadd.f32 %v2262_v53, %v558_v11  ;;  %v615_v26 = vmax.f32 %v567_v18, 0.0 }
 0x1cc   :  { %v1770_v14 = vpop.f32.mrf.mxu1 }
 0x1cd   :  { %v570_v17 = vadd.f32 %v1770_v14, %v2262_v53  ;;  %1811 = vmatprep.mubr.bf16.mxu0 %v631_v12  ;;  %v613_v24 = vmax.f32 %v559_v15, 0.0 }
 0x1ce   :  { %v561_v19 = vpop.f32.mrf.mxu1  ;;  %1812 = vmatmul.mubr.bf16.gmra.mxu0 %v632_v13 }
 0x1cf   :  { %v562_v21 = vadd.f32 %v2262_v53, %v561_v19  ;;  %v616_v22 = vmax.f32 %v570_v17, 0.0 }
 0x1d0   :  { %v1773_v23 = vpop.f32.mrf.mxu1 }
 0x1d1   :  { %v614_v20 = vmax.f32 %v562_v21, 0.0  ;;  %v634_v7 = vpack.c.bf16 %v616_v22, %v615_v26  ;;  %v583_v31 = vadd.f32 %v1773_v23, %v2262_v53 }
 0x1d2   :  { %v574_v27 = vpop.f32.mrf.mxu1 }
 0x1d3   :  { %v633_v0 = vpack.c.bf16 %v614_v20, %v613_v24  ;;  %v575_v29 = vadd.f32 %v2262_v53, %v574_v27  ;;  %v619_v37 = vmax.f32 %v583_v31, 0.0 }
 0x1d4   :  { %v1774_v28 = vpop.f32.mrf.mxu1 }
 0x1d5   :  { %v586_v30 = vadd.f32 %v1774_v28, %v2262_v53  ;;  %1815 = vmatprep.mubr.bf16.mxu0 %v633_v0  ;;  %v617_v35 = vmax.f32 %v575_v29, 0.0 }
 0x1d6   :  { %v577_v32 = vpop.f32.mrf.mxu1  ;;  %1816 = vmatmul.mubr.bf16.gmra.mxu0 %v634_v7 }
 0x1d7   :  { %v578_v33 = vadd.f32 %v2262_v53, %v577_v32  ;;  %v620_v34 = vmax.f32 %v586_v30, 0.0 }
 0x1d9   :  { %v618_v36 = vmax.f32 %v578_v33, 0.0  ;;  %v636_v38 = vpack.c.bf16 %v620_v34, %v619_v37 }
 0x1db   :  { %v635_v16 = vpack.c.bf16 %v618_v36, %v617_v35 }
 0x1dd   :  { %1819 = vmatprep.mubr.bf16.mxu0 %v635_v16 }
 0x1de   :  { %1820 = vmatmul.mubr.bf16.gmra.mxu0 %v636_v38 }
 0x266   :  { %v1793_v40 = vpop.f32.mrf.mxu0 }
 0x267   :  { %v2302_v41 = vadd.f32 %v1793_v40, %v2299_v25 }
 0x268   :  { %v742_v42 = vpop.f32.mrf.mxu0 }
 0x269   :  { %v2305_v53 = vadd.f32 %v2299_v25, %v742_v42  ;;  %873 = vmax.xlane.f32.xlu1 %v2302_v41 }
 0x26a   :  { %v1794_v43 = vpop.f32.mrf.mxu0 }
 0x26b   :  { %v2309_v44 = vadd.f32 %v1794_v43, %v2299_v25  ;;  %869 = vmax.xlane.f32.xlu0 %v2305_v53 }
 0x26c   :  { %v745_v45 = vpop.f32.mrf.mxu0 }
 0x26d   :  { %v2313_v46 = vadd.f32 %v2299_v25, %v745_v45  ;;  %875 = vmax.xlane.f32.xlu1 %v2309_v44 }
 0x26e   :  { %v1797_v47 = vpop.f32.mrf.mxu0 }
 0x26f   :  { %871 = vmax.xlane.f32.xlu0 %v2313_v46  ;;  %v2318_v49 = vadd.f32 %v1797_v47, %v2299_v25 }
 0x270   :  { %v758_v48 = vpop.f32.mrf.mxu0 }
 0x271   :  { %v2325_v51 = vadd.f32 %v2299_v25, %v758_v48 }
 0x272   :  { %v1798_v39 = vpop.f32.mrf.mxu0 }
 0x273   :  { %v2321_v50 = vadd.f32 %v1798_v39, %v2299_v25  ;;  %881 = vmax.xlane.f32.xlu0 %v2318_v49 }
 0x274   :  { %v761_v2 = vpop.f32.mrf.mxu0 }
 0x275   :  { %883 = vmax.xlane.f32.xlu1 %v2321_v50  ;;  %v2329_v54 = vadd.f32 %v2299_v25, %v761_v2 }
 0x276   :  { %v1801_v52 = vpop.f32.mrf.mxu0 }
 0x277   :  { %877 = vmax.xlane.f32.xlu0 %v2325_v51  ;;  %v2333_v56 = vadd.f32 %v1801_v52, %v2299_v25 }
 0x278   :  { %v774_v55 = vpop.f32.mrf.mxu0 }
 0x279   :  { %879 = vmax.xlane.f32.xlu1 %v2329_v54  ;;  %v2341_v60 = vadd.f32 %v2299_v25, %v774_v55 }
 0x27a   :  { %v1802_v57 = vpop.f32.mrf.mxu0 }
 0x27b   :  { %v2337_v58 = vadd.f32 %v1802_v57, %v2299_v25  ;;  %889 = vmax.xlane.f32.xlu0 %v2333_v56 }
 0x27c   :  { %v777_v59 = vpop.f32.mrf.mxu0 }
 0x27d   :  { %891 = vmax.xlane.f32.xlu1 %v2337_v58  ;;  %v2345_v62 = vadd.f32 %v2299_v25, %v777_v59 }
 0x27e   :  { %v1805_v61 = vpop.f32.mrf.mxu0 }
 0x27f   :  { %885 = vmax.xlane.f32.xlu0 %v2341_v60  ;;  %v2349_v1 = vadd.f32 %v1805_v61, %v2299_v25 }
 0x280   :  { %v790_v63 = vpop.f32.mrf.mxu0 }
 0x281   :  { %887 = vmax.xlane.f32.xlu1 %v2345_v62  ;;  %v2357_v6 = vadd.f32 %v2299_v25, %v790_v63 }
 0x282   :  { %v1806_v4 = vpop.f32.mrf.mxu0 }
 0x283   :  { %v2353_v3 = vadd.f32 %v1806_v4, %v2299_v25  ;;  %897 = vmax.xlane.f32.xlu0 %v2349_v1 }
 0x284   :  { %v793_v5 = vpop.f32.mrf.mxu0 }
 0x285   :  { %899 = vmax.xlane.f32.xlu1 %v2353_v3  ;;  %v2361_v9 = vadd.f32 %v2299_v25, %v793_v5 }
 0x286   :  { %v1809_v8 = vpop.f32.mrf.mxu0 }
 0x287   :  { %893 = vmax.xlane.f32.xlu0 %v2357_v6  ;;  %v2365_v11 = vadd.f32 %v1809_v8, %v2299_v25 }
 0x288   :  { %v806_v10 = vpop.f32.mrf.mxu0 }
 0x289   :  { %895 = vmax.xlane.f32.xlu1 %v2361_v9  ;;  %v2373_v15 = vadd.f32 %v2299_v25, %v806_v10 }
 0x28a   :  { %v1810_v12 = vpop.f32.mrf.mxu0 }
 0x28b   :  { %v2369_v13 = vadd.f32 %v1810_v12, %v2299_v25  ;;  %905 = vmax.xlane.f32.xlu0 %v2365_v11 }
 0x28c   :  { %v809_v14 = vpop.f32.mrf.mxu0 }
 0x28d   :  { %907 = vmax.xlane.f32.xlu1 %v2369_v13  ;;  %v2377_v18 = vadd.f32 %v2299_v25, %v809_v14 }
 0x28e   :  { %v1813_v17 = vpop.f32.mrf.mxu0 }
 0x28f   :  { %901 = vmax.xlane.f32.xlu0 %v2373_v15  ;;  %v2381_v21 = vadd.f32 %v1813_v17, %v2299_v25 }
 0x290   :  { %v822_v19 = vpop.f32.mrf.mxu0 }
 0x291   :  { %903 = vmax.xlane.f32.xlu1 %v2377_v18  ;;  %v2389_v20 = vadd.f32 %v2299_v25, %v822_v19 }
 0x292   :  { %v1814_v22 = vpop.f32.mrf.mxu0 }
 0x293   :  { %v2385_v23 = vadd.f32 %v1814_v22, %v2299_v25  ;;  %913 = vmax.xlane.f32.xlu0 %v2381_v21 }
 0x294   :  { %v825_v24 = vpop.f32.mrf.mxu0 }
 0x295   :  { %915 = vmax.xlane.f32.xlu1 %v2385_v23  ;;  %v2393_v27 = vadd.f32 %v2299_v25, %v825_v24 }
 0x296   :  { %v1817_v26 = vpop.f32.mrf.mxu0 }
 0x297   :  { %909 = vmax.xlane.f32.xlu0 %v2389_v20  ;;  %v2397_v7 = vadd.f32 %v1817_v26, %v2299_v25 }
 0x298   :  { %v838_v0 = vpop.f32.mrf.mxu0 }
 0x299   :  { %911 = vmax.xlane.f32.xlu1 %v2393_v27  ;;  %v2405_v31 = vadd.f32 %v2299_v25, %v838_v0 }
 0x29a   :  { %v1818_v28 = vpop.f32.mrf.mxu0 }
 0x29b   :  { %v2401_v29 = vadd.f32 %v1818_v28, %v2299_v25  ;;  %921 = vmax.xlane.f32.xlu0 %v2397_v7 }
 0x29c   :  { %v841_v30 = vpop.f32.mrf.mxu0 }
 0x29d   :  { %923 = vmax.xlane.f32.xlu1 %v2401_v29  ;;  %v2409_v33 = vadd.f32 %v2299_v25, %v841_v30 }
 0x29e   :  { %v1821_v32 = vpop.f32.mrf.mxu0 }
 0x29f   :  { %917 = vmax.xlane.f32.xlu0 %v2405_v31  ;;  %v2418_v16 = vadd.f32 %v1821_v32, %v2299_v25 }
 0x2a0   :  { %v854_v34 = vpop.f32.mrf.mxu0 }
 0x2a1   :  { %v2413_v35 = vadd.f32 %v2299_v25, %v854_v34  ;;  %919 = vmax.xlane.f32.xlu1 %v2409_v33 }
 0x2a2   :  { %v1822_v36 = vpop.f32.mrf.mxu0 }
 0x2a3   :  { %925 = vmax.xlane.f32.xlu0 %v2413_v35  ;;  %v2426_v40 = vadd.f32 %v1822_v36, %v2299_v25 }
 0x2a4   :  { %v857_v37 = vpop.f32.mrf.mxu0 }
 0x2a5   :  { %v2421_v38 = vadd.f32 %v2299_v25, %v857_v37 }
 0x2a7   :  { %927 = vmax.xlane.f32.xlu1 %v2421_v38  ;;  %929 = vmax.xlane.f32.xlu0 %v2418_v16 }
 0x2ab   :  { %931 = vmax.xlane.f32.xlu1 %v2426_v40 }
 0x2f2   :  { %v874_v42 = vpop.xlane.xlu1 %873 }
 0x2f3   :  { %v935_v43 = vsub.f32 %v2302_v41, %v874_v42 }
 0x2f4   :  { %v870_v45 = vpop.xlane.xlu0 %869 }
 0x2f5   :  { %v969_v47 = vmul.f32 1.442695, %v935_v43  ;;  %v933_v48 = vsub.f32 %v2305_v53, %v870_v45 }
 0x2f6   :  { %v876_v39 = vpop.xlane.xlu1 %875 }
 0x2f7   :  { %1848 = vpow2.f32 %v969_v47  ;;  %v965_v2 = vmul.f32 1.442695, %v933_v48  ;;  %v936_v52 = vsub.f32 %v2309_v44, %v876_v39 }
 0x2f8   :  { %v872_v55 = vpop.xlane.xlu0 %871 }
 0x2f9   :  { %v971_v57 = vmul.f32 1.442695, %v936_v52  ;;  %v934_v59 = vsub.f32 %v2313_v46, %v872_v55  ;;  %1850 = vpow2.f32 %v965_v2 }
 0x2fb   :  { %1852 = vpow2.f32 %v971_v57  ;;  %v967_v25 = vmul.f32 1.442695, %v934_v59 }
 0x2fc   :  { %v882_v61 = vpop.xlane.xlu0 %881 }
 0x2fd   :  { %v939_v63 = vsub.f32 %v2318_v49, %v882_v61  ;;  %1854 = vpow2.f32 %v967_v25 }
 0x2fe   :  { %v884_v41 = vpop.xlane.xlu1 %883 }
 0x2ff   :  { %v977_v4 = vmul.f32 1.442695, %v939_v63  ;;  %v940_v53 = vsub.f32 %v2321_v50, %v884_v41 }
 0x300   :  { %v878_v5 = vpop.xlane.xlu0 %877 }
 0x301   :  { %1856 = vpow2.f32 %v977_v4  ;;  %v979_v8 = vmul.f32 1.442695, %v940_v53  ;;  %v937_v44 = vsub.f32 %v2325_v51, %v878_v5 }
 0x302   :  { %v880_v10 = vpop.xlane.xlu1 %879 }
 0x303   :  { %1858 = vpow2.f32 %v979_v8  ;;  %v973_v12 = vmul.f32 1.442695, %v937_v44  ;;  %v938_v46 = vsub.f32 %v2329_v54, %v880_v10 }
 0x304   :  { %v2437_v14 = vpop.eup %1848  ;;  %v890_v17 = vpop.xlane.xlu0 %889 }
 0x305   :  { %1860 = vpow2.f32 %v973_v12  ;;  %v975_v49 = vmul.f32 1.442695, %v938_v46  ;;  %v943_v19 = vsub.f32 %v2333_v56, %v890_v17  ;;  %1033 = vadd.xlane.f32.xlu0 %v2437_v14 }
 0x306   :  { %v892_v50 = vpop.xlane.xlu1 %891  ;;  %v2441_v22 = vpop.eup %1850 }
 0x307   :  { %1862 = vpow2.f32 %v975_v49  ;;  %v985_v24 = vmul.f32 1.442695, %v943_v19  ;;  %v944_v51 = vsub.f32 %v2337_v58, %v892_v50 }
 0x308   :  { %v2444_v26 = vpop.eup %1852  ;;  %v886_v0 = vpop.xlane.xlu0 %885 }
 0x309   :  { %1864 = vpow2.f32 %v985_v24  ;;  %v987_v54 = vmul.f32 1.442695, %v944_v51  ;;  %v941_v28 = vsub.f32 %v2341_v60, %v886_v0  ;;  %1035 = vadd.xlane.f32.xlu1 %v2444_v26  ;;  %1029 = vadd.xlane.f32.xlu0 %v2441_v22 }
 0x30a   :  { %v888_v56 = vpop.xlane.xlu1 %887  ;;  %v2450_v34 = vpop.eup %1854 }
 0x30b   :  { %1866 = vpow2.f32 %v987_v54  ;;  %v981_v30 = vmul.f32 1.442695, %v941_v28  ;;  %v942_v32 = vsub.f32 %v2345_v62, %v888_v56 }
 0x30c   :  { %v898_v36 = vpop.xlane.xlu0 %897 }
 0x30d   :  { %1868 = vpow2.f32 %v981_v30  ;;  %v983_v58 = vmul.f32 1.442695, %v942_v32  ;;  %v947_v37 = vsub.f32 %v2349_v1, %v898_v36  ;;  %1031 = vadd.xlane.f32.xlu1 %v2450_v34 }
 0x30e   :  { %v2454_v42 = vpop.eup %1856  ;;  %v900_v60 = vpop.xlane.xlu1 %899 }
 0x30f   :  { %1870 = vpow2.f32 %v983_v58  ;;  %v993_v43 = vmul.f32 1.442695, %v947_v37  ;;  %v948_v45 = vsub.f32 %v2353_v3, %v900_v60  ;;  %1041 = vadd.xlane.f32.xlu0 %v2454_v42 }
 0x310   :  { %v2458_v47 = vpop.eup %1858  ;;  %v894_v62 = vpop.xlane.xlu0 %893 }
 0x311   :  { %1872 = vpow2.f32 %v993_v43  ;;  %v995_v48 = vmul.f32 1.442695, %v948_v45  ;;  %v945_v39 = vsub.f32 %v2357_v6, %v894_v62  ;;  %1043 = vadd.xlane.f32.xlu1 %v2458_v47 }
 0x312   :  { %v2462_v1 = vpop.eup %1860  ;;  %v896_v2 = vpop.xlane.xlu1 %895 }
 0x313   :  { %1874 = vpow2.f32 %v995_v48  ;;  %v989_v52 = vmul.f32 1.442695, %v945_v39  ;;  %v946_v55 = vsub.f32 %v2361_v9, %v896_v2  ;;  %1037 = vadd.xlane.f32.xlu0 %v2462_v1 }
 0x314   :  { %v2466_v3 = vpop.eup %1862  ;;  %v906_v57 = vpop.xlane.xlu0 %905 }
 0x315   :  { %1876 = vpow2.f32 %v989_v52  ;;  %v991_v59 = vmul.f32 1.442695, %v946_v55  ;;  %v951_v25 = vsub.f32 %v2365_v11, %v906_v57  ;;  %1039 = vadd.xlane.f32.xlu1 %v2466_v3 }
 0x316   :  { %v2470_v6 = vpop.eup %1864  ;;  %v908_v61 = vpop.xlane.xlu1 %907 }
 0x317   :  { %1878 = vpow2.f32 %v991_v59  ;;  %v1001_v63 = vmul.f32 1.442695, %v951_v25  ;;  %v952_v41 = vsub.f32 %v2369_v13, %v908_v61  ;;  %1049 = vadd.xlane.f32.xlu0 %v2470_v6 }
 0x318   :  { %v2474_v9 = vpop.eup %1866  ;;  %v902_v4 = vpop.xlane.xlu0 %901 }
 0x319   :  { %1880 = vpow2.f32 %v1001_v63  ;;  %v1003_v53 = vmul.f32 1.442695, %v952_v41  ;;  %v949_v5 = vsub.f32 %v2373_v15, %v902_v4  ;;  %1051 = vadd.xlane.f32.xlu1 %v2474_v9 }
 0x31a   :  { %v2478_v11 = vpop.eup %1868  ;;  %v904_v8 = vpop.xlane.xlu1 %903 }
 0x31b   :  { %1882 = vpow2.f32 %v1003_v53  ;;  %v997_v44 = vmul.f32 1.442695, %v949_v5  ;;  %v950_v10 = vsub.f32 %v2377_v18, %v904_v8  ;;  %1045 = vadd.xlane.f32.xlu0 %v2478_v11 }
 0x31c   :  { %v2482_v13 = vpop.eup %1870  ;;  %v914_v12 = vpop.xlane.xlu0 %913 }
 0x31d   :  { %1884 = vpow2.f32 %v997_v44  ;;  %v999_v46 = vmul.f32 1.442695, %v950_v10  ;;  %v955_v17 = vsub.f32 %v2381_v21, %v914_v12  ;;  %1047 = vadd.xlane.f32.xlu1 %v2482_v13 }
 0x31e   :  { %v2486_v15 = vpop.eup %1872  ;;  %v916_v49 = vpop.xlane.xlu1 %915 }
 0x31f   :  { %1886 = vpow2.f32 %v999_v46  ;;  %v1009_v19 = vmul.f32 1.442695, %v955_v17  ;;  %v956_v50 = vsub.f32 %v2385_v23, %v916_v49  ;;  %1057 = vadd.xlane.f32.xlu0 %v2486_v15 }
 0x320   :  { %v2490_v18 = vpop.eup %1874  ;;  %v910_v24 = vpop.xlane.xlu0 %909 }
 0x321   :  { %1888 = vpow2.f32 %v1009_v19  ;;  %v1011_v51 = vmul.f32 1.442695, %v956_v50  ;;  %v953_v0 = vsub.f32 %v2389_v20, %v910_v24  ;;  %1059 = vadd.xlane.f32.xlu1 %v2490_v18 }
 0x322   :  { %v2494_v21 = vpop.eup %1876  ;;  %v912_v54 = vpop.xlane.xlu1 %911 }
 0x323   :  { %1890 = vpow2.f32 %v1011_v51  ;;  %v1005_v28 = vmul.f32 1.442695, %v953_v0  ;;  %v954_v56 = vsub.f32 %v2393_v27, %v912_v54  ;;  %1053 = vadd.xlane.f32.xlu0 %v2494_v21 }
 0x324   :  { %v2498_v23 = vpop.eup %1878  ;;  %v922_v30 = vpop.xlane.xlu0 %921 }
 0x325   :  { %1892 = vpow2.f32 %v1005_v28  ;;  %v1007_v32 = vmul.f32 1.442695, %v954_v56  ;;  %v959_v36 = vsub.f32 %v2397_v7, %v922_v30  ;;  %1055 = vadd.xlane.f32.xlu1 %v2498_v23 }
 0x326   :  { %v2502_v20 = vpop.eup %1880  ;;  %v924_v58 = vpop.xlane.xlu1 %923 }
 0x327   :  { %1894 = vpow2.f32 %v1007_v32  ;;  %v1017_v37 = vmul.f32 1.442695, %v959_v36  ;;  %v960_v60 = vsub.f32 %v2401_v29, %v924_v58  ;;  %1065 = vadd.xlane.f32.xlu0 %v2502_v20 }
 0x328   :  { %v2506_v27 = vpop.eup %1882  ;;  %v918_v43 = vpop.xlane.xlu0 %917 }
 0x329   :  { %1896 = vpow2.f32 %v1017_v37  ;;  %v1019_v45 = vmul.f32 1.442695, %v960_v60  ;;  %v957_v62 = vsub.f32 %v2405_v31, %v918_v43  ;;  %1067 = vadd.xlane.f32.xlu1 %v2506_v27 }
 0x32a   :  { %v2510_v7 = vpop.eup %1884  ;;  %v920_v48 = vpop.xlane.xlu1 %919 }
 0x32b   :  { %1898 = vpow2.f32 %v1019_v45  ;;  %v1013_v39 = vmul.f32 1.442695, %v957_v62  ;;  %v958_v2 = vsub.f32 %v2409_v33, %v920_v48  ;;  %1061 = vadd.xlane.f32.xlu0 %v2510_v7 }
 0x32c   :  { %v2514_v29 = vpop.eup %1886  ;;  %v926_v52 = vpop.xlane.xlu0 %925 }
 0x32d   :  { %1900 = vpow2.f32 %v1013_v39  ;;  %v1015_v55 = vmul.f32 1.442695, %v958_v2  ;;  %v961_v57 = vsub.f32 %v2413_v35, %v926_v52  ;;  %1063 = vadd.xlane.f32.xlu1 %v2514_v29 }
 0x32e   :  { %v2518_v31 = vpop.eup %1888 }
 0x32f   :  { %1902 = vpow2.f32 %v1015_v55  ;;  %v1021_v59 = vmul.f32 1.442695, %v961_v57  ;;  %1073 = vadd.xlane.f32.xlu0 %v2518_v31 }
 0x330   :  { %v2521_v25 = vpop.eup %1890  ;;  %v928_v33 = vpop.xlane.xlu1 %927 }
 0x331   :  { %v930_v61 = vpop.xlane.xlu0 %929  ;;  %1904 = vpow2.f32 %v1021_v59  ;;  %v962_v63 = vsub.f32 %v2421_v38, %v928_v33  ;;  %1075 = vadd.xlane.f32.xlu1 %v2521_v25 }
 0x332   :  { %v963_v41 = vsub.f32 %v2418_v16, %v930_v61  ;;  %v2526_v35 = vpop.eup %1892 }
 0x333   :  { %v1023_v4 = vmul.f32 1.442695, %v962_v63  ;;  %1069 = vadd.xlane.f32.xlu0 %v2526_v35 }
 0x334   :  { %v1025_v53 = vmul.f32 1.442695, %v963_v41  ;;  %v2529_v5 = vpop.eup %1894  ;;  %v932_v8 = vpop.xlane.xlu1 %931 }
 0x335   :  { %1906 = vpow2.f32 %v1023_v4  ;;  %v964_v44 = vsub.f32 %v2426_v40, %v932_v8  ;;  %1071 = vadd.xlane.f32.xlu1 %v2529_v5 }
 0x336   :  { %v2533_v10 = vpop.eup %1896  ;;  %1908 = vpow2.f32 %v1025_v53 }
 0x337   :  { %v1027_v16 = vmul.f32 1.442695, %v964_v44  ;;  %1081 = vadd.xlane.f32.xlu0 %v2533_v10 }
 0x338   :  { %v2536_v38 = vpop.eup %1898 }
 0x339   :  { %1910 = vpow2.f32 %v1027_v16  ;;  %1083 = vadd.xlane.f32.xlu1 %v2536_v38 }
 0x33a   :  { %v2539_v12 = vpop.eup %1900 }
 0x33b   :  { %1077 = vadd.xlane.f32.xlu0 %v2539_v12 }
 0x33c   :  { %v2542_v46 = vpop.eup %1902 }
 0x33d   :  { %1079 = vadd.xlane.f32.xlu1 %v2542_v46 }
 0x33e   :  { %v2545_v40 = vpop.eup %1904 }
 0x33f   :  { %1085 = vadd.xlane.f32.xlu0 %v2545_v40 }
 0x342   :  { %v2548_v17 = vpop.eup %1906 }
 0x343   :  { %v2550_v49 = vpop.eup %1908  ;;  %1087 = vadd.xlane.f32.xlu1 %v2548_v17 }
 0x344   :  { %1089 = vadd.xlane.f32.xlu0 %v2550_v49 }
 0x346   :  { %v2554_v19 = vpop.eup %1910 }
 0x347   :  { %1091 = vadd.xlane.f32.xlu1 %v2554_v19 }
 0x38e   :  { %v1034_v50 = vpop.xlane.xlu0 %1033 }
 0x38f   :  { %1912 = vrcp.f32 %v1034_v50 }
 0x392   :  { %v1036_v24 = vpop.xlane.xlu1 %1035  ;;  %v1030_v51 = vpop.xlane.xlu0 %1029 }
 0x393   :  { %1914 = vrcp.f32 %v1036_v24 }
 0x394   :  { %1916 = vrcp.f32 %v1030_v51 }
 0x396   :  { %v1032_v0 = vpop.xlane.xlu1 %1031 }
 0x397   :  { %1918 = vrcp.f32 %v1032_v0 }
 0x398   :  { %v1042_v54 = vpop.xlane.xlu0 %1041 }
 0x399   :  { %1920 = vrcp.f32 %v1042_v54 }
 0x39a   :  { %v1044_v28 = vpop.xlane.xlu1 %1043 }
 0x39b   :  { %1922 = vrcp.f32 %v1044_v28 }
 0x39c   :  { %v1913_v56 = vpop.eup %1912  ;;  %v1038_v30 = vpop.xlane.xlu0 %1037 }
 0x39d   :  { %v1127_v32 = vmul.f32 %v1913_v56, %v1034_v50  ;;  %1924 = vrcp.f32 %v1038_v30 }
 0x39e   :  { %v1040_v36 = vpop.xlane.xlu1 %1039 }
 0x39f   :  { %v1159_v58 = vsub.f32 2.0, %v1127_v32  ;;  %1926 = vrcp.f32 %v1040_v36 }
 0x3a0   :  { %v1915_v37 = vpop.eup %1914  ;;  %v1050_v60 = vpop.xlane.xlu0 %1049 }
 0x3a1   :  { %v1917_v43 = vpop.eup %1916  ;;  %v1128_v45 = vmul.f32 %v1915_v37, %v1036_v24  ;;  %1928 = vrcp.f32 %v1050_v60  ;;  %v1191_v62 = vmul.f32 %v1913_v56, %v1159_v58 }
 0x3a2   :  { %v1125_v48 = vmul.f32 %v1917_v43, %v1030_v51  ;;  %v1052_v39 = vpop.xlane.xlu1 %1051 }
 0x3a3   :  { %v1160_v2 = vsub.f32 2.0, %v1128_v45  ;;  %1930 = vrcp.f32 %v1052_v39  ;;  %v1223_v63 = vmul.f32 %v2437_v14, %v1191_v62 }
 0x3a4   :  { %v1919_v52 = vpop.eup %1918  ;;  %v1157_v55 = vsub.f32 2.0, %v1125_v48  ;;  %v1046_v57 = vpop.xlane.xlu0 %1045 }
 0x3a5   :  { %v1192_v59 = vmul.f32 %v1915_v37, %v1160_v2  ;;  %v1126_v33 = vmul.f32 %v1919_v52, %v1032_v0  ;;  %1932 = vrcp.f32 %v1046_v57 }
 0x3a6   :  { %v1921_v61 = vpop.eup %1920  ;;  %v1189_v41 = vmul.f32 %v1917_v43, %v1157_v55  ;;  %v1048_v4 = vpop.xlane.xlu1 %1047 }
 0x3a7   :  { %v1224_v53 = vmul.f32 %v2444_v26, %v1192_v59  ;;  %v1158_v8 = vsub.f32 2.0, %v1126_v33  ;;  %v1131_v44 = vmul.f32 %v1921_v61, %v1042_v54  ;;  %1934 = vrcp.f32 %v1048_v4 }
 0x3a8   :  { %v1923_v16 = vpop.eup %1922  ;;  %v1058_v50 = vpop.xlane.xlu0 %1057  ;;  %v1221_v0 = vmul.f32 %v2441_v22, %v1189_v41 }
 0x3a9   :  { %v1538_v24 = vpack.c.bf16 %v1224_v53, %v1223_v63  ;;  %v1190_v51 = vmul.f32 %v1919_v52, %v1158_v8  ;;  %v1163_v56 = vsub.f32 2.0, %v1131_v44  ;;  %v1132_v32 = vmul.f32 %v1923_v16, %v1044_v28 }
 0x3aa   :  { %v1925_v58 = vpop.eup %1924  ;;  %1936 = vrcp.f32 %v1058_v50  ;;  %v1060_v37 = vpop.xlane.xlu1 %1059 }
 0x3ab   :  { %1610 = vst [vmem:[#allocation2 + $0x8] sm:$0xff] %v1538_v24   ;;  %v1222_v14 = vmul.f32 %v2450_v34, %v1190_v51  ;;  %v1195_v43 = vmul.f32 %v1921_v61, %v1163_v56  ;;  %v1164_v45 = vsub.f32 2.0, %v1132_v32  ;;  %v1129_v26 = vmul.f32 %v1925_v58, %v1038_v30 }
 0x3ac   :  { %v1927_v62 = vpop.eup %1926  ;;  %1938 = vrcp.f32 %v1060_v37  ;;  %v2561_v54 = vpop.xlane.xlu0 %1053 }
 0x3ad   :  { %v1533_v48 = vpack.c.bf16 %v1222_v14, %v1221_v0  ;;  %v1196_v2 = vmul.f32 %v1923_v16, %v1164_v45  ;;  %v1161_v52 = vsub.f32 2.0, %v1129_v26  ;;  %v1130_v28 = vmul.f32 %v1927_v62, %v1040_v36 }
 0x3ae   :  { %v1929_v55 = vpop.eup %1928  ;;  %1940 = vrcp.f32 %v2561_v54  ;;  %v1056_v22 = vpop.xlane.xlu1 %1055  ;;  %v1227_v59 = vmul.f32 %v2454_v42, %v1195_v43 }
 0x3af   :  { %1534 = vst [vmem:[#allocation2] sm:$0xff] %v1533_v48   ;;  %v1228_v34 = vmul.f32 %v2458_v47, %v1196_v2  ;;  %v1135_v33 = vmul.f32 %v1929_v55, %v1050_v60  ;;  %1942 = vrcp.f32 %v1056_v22  ;;  %v1193_v61 = vmul.f32 %v1925_v58, %v1161_v52 }
 0x3b0   :  { %v1931_v30 = vpop.eup %1930  ;;  %v1162_v63 = vsub.f32 2.0, %v1130_v28  ;;  %v2566_v41 = vpop.xlane.xlu0 %1065 }
 0x3b1   :  { %v1548_v53 = vpack.c.bf16 %v1228_v34, %v1227_v59  ;;  %v1167_v8 = vsub.f32 2.0, %v1135_v33  ;;  %v1136_v44 = vmul.f32 %v1931_v30, %v1052_v39  ;;  %1944 = vrcp.f32 %v2566_v41 }
 0x3b2   :  { %v1933_v16 = vpop.eup %1932  ;;  %v1194_v36 = vmul.f32 %v1927_v62, %v1162_v63  ;;  %v1068_v24 = vpop.xlane.xlu1 %1067  ;;  %v1225_v60 = vmul.f32 %v2462_v1, %v1193_v61 }
 0x3b3   :  { %1612 = vst [vmem:[#allocation2 + $0x18] sm:$0xff] %v1548_v53   ;;  %v1199_v51 = vmul.f32 %v1929_v55, %v1167_v8  ;;  %v1168_v42 = vsub.f32 2.0, %v1136_v44  ;;  %v1133_v56 = vmul.f32 %v1933_v16, %v1046_v57  ;;  %1946 = vrcp.f32 %v1068_v24 }
 0x3b4   :  { %v1935_v47 = vpop.eup %1934  ;;  %v1226_v32 = vmul.f32 %v2466_v3, %v1194_v36  ;;  %v2571_v58 = vpop.xlane.xlu0 %1061 }
 0x3b5   :  { %v1200_v0 = vmul.f32 %v1931_v30, %v1168_v42  ;;  %v1165_v14 = vsub.f32 2.0, %v1133_v56  ;;  %v1134_v39 = vmul.f32 %v1935_v47, %v1048_v4  ;;  %v1231_v45 = vmul.f32 %v2470_v6, %v1199_v51 }
 0x3b6   :  { %v1543_v43 = vpack.c.bf16 %v1226_v32, %v1225_v60  ;;  %1948 = vrcp.f32 %v2571_v58  ;;  %v1064_v26 = vpop.xlane.xlu1 %1063 }
 0x3b7   :  { %v1937_v62 = vpop.eup %1936  ;;  %v1232_v57 = vmul.f32 %v2474_v9, %v1200_v0  ;;  %v1197_v48 = vmul.f32 %v1933_v16, %v1165_v14  ;;  %v1166_v2 = vsub.f32 2.0, %v1134_v39  ;;  %1950 = vrcp.f32 %v1064_v26 }
 0x3b8   :  { %1611 = vst [vmem:[#allocation2 + $0x10] sm:$0xff] %v1543_v43   ;;  %v1139_v1 = vmul.f32 %v1937_v62, %v1058_v50  ;;  %v1074_v3 = vpop.xlane.xlu0 %1073 }
 0x3b9   :  { %v1939_v52 = vpop.eup %1938  ;;  %v1558_v55 = vpack.c.bf16 %v1232_v57, %v1231_v45  ;;  %v1198_v28 = vmul.f32 %v1935_v47, %v1166_v2  ;;  %1952 = vrcp.f32 %v1074_v3  ;;  %v1229_v33 = vmul.f32 %v2478_v11, %v1197_v48 }
 0x3ba   :  { %v1171_v4 = vsub.f32 2.0, %v1139_v1  ;;  %v1140_v59 = vmul.f32 %v1939_v52, %v1060_v37  ;;  %v1076_v34 = vpop.xlane.xlu1 %1075 }
 0x3bb   :  { %v1941_v6 = vpop.eup %1940  ;;  %1614 = vst [vmem:[#allocation2 + $0x28] sm:$0xff] %v1558_v55   ;;  %v1230_v30 = vmul.f32 %v2482_v13, %v1198_v28  ;;  %1954 = vrcp.f32 %v1076_v34 }
 0x3bc   :  { %v1943_v9 = vpop.eup %1942  ;;  %v1203_v61 = vmul.f32 %v1937_v62, %v1171_v4  ;;  %v1172_v63 = vsub.f32 2.0, %v1140_v59  ;;  %v1137_v50 = vmul.f32 %v1941_v6, %v2561_v54  ;;  %v1070_v53 = vpop.xlane.xlu0 %1069 }
 0x3bd   :  { %v1553_v8 = vpack.c.bf16 %v1230_v30, %v1229_v33  ;;  %v1138_v44 = vmul.f32 %v1943_v9, %v1056_v22  ;;  %1956 = vrcp.f32 %v1070_v53 }
 0x3be   :  { %v1204_v16 = vmul.f32 %v1939_v52, %v1172_v63  ;;  %v1169_v36 = vsub.f32 2.0, %v1137_v50  ;;  %v1072_v37 = vpop.xlane.xlu1 %1071  ;;  %v1945_v51 = vpop.eup %1944  ;;  %v1235_v13 = vmul.f32 %v2486_v15, %v1203_v61 }
 0x3bf   :  { %1613 = vst [vmem:[#allocation2 + $0x20] sm:$0xff] %v1553_v8   ;;  %v1170_v42 = vsub.f32 2.0, %v1138_v44  ;;  %1958 = vrcp.f32 %v1072_v37  ;;  %v1143_v60 = vmul.f32 %v1945_v51, %v2566_v41 }
 0x3c0   :  { %v1947_v11 = vpop.eup %1946  ;;  %v1236_v56 = vmul.f32 %v2490_v18, %v1204_v16  ;;  %v1201_v47 = vmul.f32 %v1941_v6, %v1169_v36  ;;  %v1082_v54 = vpop.xlane.xlu0 %1081 }
 0x3c1   :  { %v1202_v32 = vmul.f32 %v1943_v9, %v1170_v42  ;;  %v1144_v0 = vmul.f32 %v1947_v11, %v1068_v24  ;;  %1960 = vrcp.f32 %v1082_v54  ;;  %v1175_v14 = vsub.f32 2.0, %v1143_v60 }
 0x3c2   :  { %v1568_v22 = vpack.c.bf16 %v1236_v56, %v1235_v13  ;;  %v1084_v39 = vpop.xlane.xlu1 %1083  ;;  %v1233_v45 = vmul.f32 %v2494_v21, %v1201_v47 }
 0x3c3   :  { %v1949_v43 = vpop.eup %1948  ;;  %v1234_v62 = vmul.f32 %v2498_v23, %v1202_v32  ;;  %v1176_v57 = vsub.f32 2.0, %v1144_v0  ;;  %1962 = vrcp.f32 %v1084_v39  ;;  %v1207_v18 = vmul.f32 %v1945_v51, %v1175_v14 }
 0x3c4   :  { %v1951_v15 = vpop.eup %1950  ;;  %1616 = vst [vmem:[#allocation2 + $0x38] sm:$0xff] %v1568_v22   ;;  %v1141_v48 = vmul.f32 %v1949_v43, %v2571_v58  ;;  %v1078_v41 = vpop.xlane.xlu0 %1077 }
 0x3c5   :  { %v1563_v2 = vpack.c.bf16 %v1234_v62, %v1233_v45  ;;  %v1208_v1 = vmul.f32 %v1947_v11, %v1176_v57  ;;  %v1142_v24 = vmul.f32 %v1951_v15, %v1064_v26  ;;  %1964 = vrcp.f32 %v1078_v41 }
 0x3c6   :  { %v1953_v52 = vpop.eup %1952  ;;  %v1239_v55 = vmul.f32 %v2502_v20, %v1207_v18  ;;  %v1173_v28 = vsub.f32 2.0, %v1141_v48  ;;  %v1080_v4 = vpop.xlane.xlu1 %1079 }
 0x3c7   :  { %1615 = vst [vmem:[#allocation2 + $0x30] sm:$0xff] %v1563_v2   ;;  %v1240_v21 = vmul.f32 %v2506_v27, %v1208_v1  ;;  %v1174_v23 = vsub.f32 2.0, %v1142_v24  ;;  %v1147_v59 = vmul.f32 %v1953_v52, %v1074_v3  ;;  %1966 = vrcp.f32 %v1080_v4 }
 0x3c8   :  { %v1955_v6 = vpop.eup %1954  ;;  %v1205_v33 = vmul.f32 %v1949_v43, %v1173_v28  ;;  %v1086_v30 = vpop.xlane.xlu0 %1085 }
 0x3c9   :  { %v1578_v58 = vpack.c.bf16 %v1240_v21, %v1239_v55  ;;  %v1206_v9 = vmul.f32 %v1951_v15, %v1174_v23  ;;  %v1179_v61 = vsub.f32 2.0, %v1147_v59  ;;  %v1148_v63 = vmul.f32 %v1955_v6, %v1076_v34 }
 0x3ca   :  { %v1957_v26 = vpop.eup %1956  ;;  %v1237_v50 = vmul.f32 %v2510_v7, %v1205_v33  ;;  %1968 = vrcp.f32 %v1086_v30 }
 0x3cb   :  { %1618 = vst [vmem:[#allocation2 + $0x48] sm:$0xff] %v1578_v58   ;;  %v1238_v20 = vmul.f32 %v2514_v29, %v1206_v9  ;;  %v1211_v8 = vmul.f32 %v1953_v52, %v1179_v61  ;;  %v1180_v44 = vsub.f32 2.0, %v1148_v63  ;;  %v1145_v27 = vmul.f32 %v1957_v26, %v1070_v53 }
 0x3cc   :  { %v1959_v16 = vpop.eup %1958  ;;  %v1088_v3 = vpop.xlane.xlu1 %1087 }
 0x3cd   :  { %v1573_v36 = vpack.c.bf16 %v1238_v20, %v1237_v50  ;;  %v1212_v51 = vmul.f32 %v1955_v6, %v1180_v44  ;;  %v1177_v42 = vsub.f32 2.0, %v1145_v27  ;;  %v1090_v11 = vpop.xlane.xlu0 %1089  ;;  %v1146_v56 = vmul.f32 %v1959_v16, %v1072_v37 }
 0x3ce   :  { %v1961_v13 = vpop.eup %1960  ;;  %1970 = vrcp.f32 %v1088_v3  ;;  %v1243_v34 = vmul.f32 %v2518_v31, %v1211_v8 }
 0x3cf   :  { %1617 = vst [vmem:[#allocation2 + $0x40] sm:$0xff] %v1573_v36   ;;  %v1244_v7 = vmul.f32 %v2521_v25, %v1212_v51  ;;  %v1151_v47 = vmul.f32 %v1961_v13, %v1082_v54  ;;  %1972 = vrcp.f32 %v1090_v11  ;;  %v1209_v60 = vmul.f32 %v1957_v26, %v1177_v42 }
 0x3d0   :  { %v1963_v29 = vpop.eup %1962  ;;  %v1178_v32 = vsub.f32 2.0, %v1146_v56  ;;  %v1092_v53 = vpop.xlane.xlu1 %1091 }
 0x3d1   :  { %v1588_v0 = vpack.c.bf16 %v1244_v7, %v1243_v34  ;;  %v1183_v22 = vsub.f32 2.0, %v1151_v47  ;;  %v1152_v14 = vmul.f32 %v1963_v29, %v1084_v39  ;;  %1974 = vrcp.f32 %v1092_v53 }
 0x3d2   :  { %v1965_v43 = vpop.eup %1964  ;;  %v1210_v45 = vmul.f32 %v1959_v16, %v1178_v32  ;;  %v1241_v31 = vmul.f32 %v2526_v35, %v1209_v60 }
 0x3d3   :  { %1620 = vst [vmem:[#allocation2 + $0x58] sm:$0xff] %v1588_v0   ;;  %v1215_v37 = vmul.f32 %v1961_v13, %v1183_v22  ;;  %v1184_v62 = vsub.f32 2.0, %v1152_v14  ;;  %v1149_v57 = vmul.f32 %v1965_v43, %v1078_v41 }
 0x3d4   :  { %v1967_v15 = vpop.eup %1966  ;;  %v1242_v25 = vmul.f32 %v2529_v5, %v1210_v45 }
 0x3d5   :  { %v1216_v54 = vmul.f32 %v1963_v29, %v1184_v62  ;;  %v1181_v18 = vsub.f32 2.0, %v1149_v57  ;;  %v1150_v48 = vmul.f32 %v1967_v15, %v1080_v4  ;;  %v1247_v24 = vmul.f32 %v2533_v10, %v1215_v37 }
 0x3d6   :  { %v1583_v2 = vpack.c.bf16 %v1242_v25, %v1241_v31 }
 0x3d7   :  { %v1969_v1 = vpop.eup %1968  ;;  %v1248_v39 = vmul.f32 %v2536_v38, %v1216_v54  ;;  %v1213_v52 = vmul.f32 %v1965_v43, %v1181_v18  ;;  %v1182_v55 = vsub.f32 2.0, %v1150_v48 }
 0x3d8   :  { %1619 = vst [vmem:[#allocation2 + $0x50] sm:$0xff] %v1583_v2   ;;  %v1153_v28 = vmul.f32 %v1969_v1, %v1086_v30 }
 0x3d9   :  { %v1598_v21 = vpack.c.bf16 %v1248_v39, %v1247_v24  ;;  %v1214_v41 = vmul.f32 %v1967_v15, %v1182_v55  ;;  %v1245_v35 = vmul.f32 %v2539_v12, %v1213_v52 }
 0x3da   :  { %v1185_v23 = vsub.f32 2.0, %v1153_v28 }
 0x3db   :  { %v1971_v59 = vpop.eup %1970  ;;  %1622 = vst [vmem:[#allocation2 + $0x68] sm:$0xff] %v1598_v21   ;;  %v1246_v5 = vmul.f32 %v2542_v46, %v1214_v41 }
 0x3dc   :  { %v1973_v4 = vpop.eup %1972  ;;  %v1154_v6 = vmul.f32 %v1971_v59, %v1088_v3  ;;  %v1217_v10 = vmul.f32 %v1969_v1, %v1185_v23 }
 0x3dd   :  { %v1593_v33 = vpack.c.bf16 %v1246_v5, %v1245_v35  ;;  %v1155_v58 = vmul.f32 %v1973_v4, %v1090_v11 }
 0x3de   :  { %v1186_v9 = vsub.f32 2.0, %v1154_v6  ;;  %v1975_v38 = vpop.eup %1974  ;;  %v1249_v26 = vmul.f32 %v2545_v40, %v1217_v10 }
 0x3df   :  { %1621 = vst [vmem:[#allocation2 + $0x60] sm:$0xff] %v1593_v33   ;;  %v1187_v61 = vsub.f32 2.0, %v1155_v58  ;;  %v1156_v30 = vmul.f32 %v1975_v38, %v1092_v53 }
 0x3e0   :  { %v1218_v63 = vmul.f32 %v1971_v59, %v1186_v9 }
 0x3e1   :  { %v1219_v20 = vmul.f32 %v1973_v4, %v1187_v61  ;;  %v1188_v8 = vsub.f32 2.0, %v1156_v30 }
 0x3e2   :  { %v1250_v50 = vmul.f32 %v2548_v17, %v1218_v63 }
 0x3e3   :  { %v1220_v44 = vmul.f32 %v1975_v38, %v1188_v8  ;;  %v1251_v46 = vmul.f32 %v2550_v49, %v1219_v20 }
 0x3e4   :  { %v1603_v12 = vpack.c.bf16 %v1250_v50, %v1249_v26 }
 0x3e5   :  { %v1252_v27 = vmul.f32 %v2554_v19, %v1220_v44 }
 0x3e6   :  { %1623 = vst [vmem:[#allocation2 + $0x70] sm:$0xff] %v1603_v12  }
 0x3e7   :  { %v1608_v16 = vpack.c.bf16 %v1252_v27, %v1251_v46 }
 0x3e9   :  { %1624 = vst [vmem:[#allocation2 + $0x78] sm:$0xff] %v1608_v16  }
 0x3ea   :  { %1987 = shalt.err (!%p1984_p4)
}
 0x3eb   :  { %s1999_s8 = smov 64   ;;  %s2000_s9 = smov 4  }
 0x3ec   :  { %1424 = dma.vmem_to_hbm [thread:$0]  %s1419_s29, 2048, %s2611_s7, [#allocation3], %s1999_s8, %s1999_s8, %s2000_s9  }
 0x3ed   :  { %1996 = dma.done.wait [#allocation3], 2048  }
 0x3ee   :  { %1997 = vsyncadd [#allocation3], 4294965248 }
 0x3ef   :  { %1428 = vsyncpa [#allocation3], 1 }

</bundles_post_ra>
